<compile_context>
chip_gen: v7x
topology: tpu7x:2x2x1
jax: 0.10.0
libtpu: 0.0.40
codegen_flags: <defaults>
</compile_context>

<pallas_src>
import functools

import jax
import jax.numpy as jnp
from jax import lax
from jax.experimental import pallas as pl
from jax.experimental.pallas import tpu as pltpu


def _multispike(v):
    # Multispike: floor(clamp(4x, 0, 4) + 0.5) / 4  (matches torch floor(relu4(4x)+0.5)/4)
    return jnp.floor(jnp.clip(4.0 * v, 0.0, 4.0) + 0.5) * 0.25


# ----------------------------------------------------------------------------
# Kernel 1: Multispike + 1x1 conv (pwconv1) + BN1 affine, as a fused matmul.
#   A: (tm, C) channels-last rows, W: (C, med) with BN1 scale folded, b: (1, med)
# ----------------------------------------------------------------------------
def _spike_pw_bn_kernel(a_ref, w_ref, b_ref, o_ref):
    spk = _multispike(a_ref[...])
    o_ref[...] = (
        jnp.dot(spk, w_ref[...], preferred_element_type=jnp.float32) + b_ref[...]
    )


def spike_pw_bn(a, w, b, *, tm_max=2048):
    M, K = a.shape
    _, N = w.shape
    tm = M if M <= tm_max else tm_max          # tm_max is a multiple of 8
    grid = (pl.cdiv(M, tm),)
    return pl.pallas_call(
        _spike_pw_bn_kernel,
        out_shape=jax.ShapeDtypeStruct((M, N), jnp.float32),
        grid=grid,
        in_specs=[
            pl.BlockSpec((tm, K), lambda i: (i, 0)),   # A rows (spiked in-kernel)
            pl.BlockSpec((K, N), lambda i: (0, 0)),    # weight (BN scale folded)
            pl.BlockSpec((1, N), lambda i: (0, 0)),    # BN bias
        ],
        out_specs=pl.BlockSpec((tm, N), lambda i: (i, 0)),
        compiler_params=pltpu.CompilerParams(
            dimension_semantics=("parallel",),
            vmem_limit_bytes=32 * 1024 * 1024,
        ),
    )(a, w, b)


# ----------------------------------------------------------------------------
# Kernel 2: Multispike + depthwise KxK conv + 1x1 conv (pwconv2) + BN2 affine.
#   One image (H, W, Cm) per grid step, channels-last.  Zero halo kept in a
#   VMEM scratch; interior store is sublane-aligned (offset padb = 8).
# ----------------------------------------------------------------------------
def _spike_dw_pw_bn_kernel(x_ref, wdw_ref, wpw_ref, b_ref, o_ref, pad_ref, *,
                           ksize, padb):
    H = x_ref.shape[1]
    W = x_ref.shape[2]
    Cm = x_ref.shape[3]
    N = wpw_ref.shape[1]
    r = ksize // 2

    # zero the halo buffer, then drop the spiked image into its aligned interior
    pad_ref[...] = jnp.zeros(pad_ref.shape, pad_ref.dtype)
    pad_ref[padb:padb + H, padb:padb + W, :] = _multispike(x_ref[0])

    wdw = wdw_ref[...]                               # (k*k, Cm)
    acc = jnp.zeros((H, W, Cm), jnp.float32)
    for kh in range(ksize):
        for kw in range(ksize):
            h0 = padb - r + kh
            w0 = padb - r + kw
            tap = pad_ref[h0:h0 + H, w0:w0 + W, :]   # static-offset VMEM load
            acc = acc + tap * wdw[kh * ksize + kw].reshape(1, 1, Cm)

    # pwconv2 (+ folded BN2) as a channel matmul
    h2 = acc.reshape(H * W, Cm)
    out = jnp.dot(h2, wpw_ref[...], preferred_element_type=jnp.float32) + b_ref[...]
    o_ref[0] = out.reshape(H, W, N)


def spike_dw_pw_bn(y, wdw, wpw, b, *, ksize):
    TB, H, W, Cm = y.shape
    kk, _ = wdw.shape
    N = wpw.shape[1]
    padb = ((ksize // 2 + 7) // 8) * 8               # aligned halo offset (>= reach)
    kernel = functools.partial(_spike_dw_pw_bn_kernel, ksize=ksize, padb=padb)
    return pl.pallas_call(
        kernel,
        out_shape=jax.ShapeDtypeStruct((TB, H, W, N), jnp.float32),
        grid=(TB,),
        in_specs=[
            pl.BlockSpec((1, H, W, Cm), lambda n: (n, 0, 0, 0)),
            pl.BlockSpec((kk, Cm), lambda n: (0, 0)),    # depthwise taps (k*k, Cm)
            pl.BlockSpec((Cm, N), lambda n: (0, 0)),     # pw2 weight (BN2 folded)
            pl.BlockSpec((1, N), lambda n: (0, 0)),      # BN2 bias
        ],
        out_specs=pl.BlockSpec((1, H, W, N), lambda n: (n, 0, 0, 0)),
        scratch_shapes=[
            pltpu.VMEM((H + 2 * padb, W + 2 * padb, Cm), jnp.float32),
        ],
        compiler_params=pltpu.CompilerParams(
            dimension_semantics=("parallel",),
            vmem_limit_bytes=32 * 1024 * 1024,
        ),
    )(y, wdw, wpw, b)


# ----------------------------------------------------------------------------
# Full SepConv forward (inference), mirroring the PyTorch module.
# ----------------------------------------------------------------------------
def sepconv_forward(x, params):
    T, B, C, H, W = x.shape
    eps = 1e-5

    w1 = params["pw1_weight"].reshape(-1, C)          # (med, C)
    med = w1.shape[0]
    w2 = params["pw2_weight"].reshape(-1, med)        # (dim, med)
    dim_out = w2.shape[0]
    ksize = params["dw_weight"].shape[-1]
    wdw = params["dw_weight"].reshape(med, ksize * ksize)

    # Fold eval-mode BatchNorm into the pointwise conv weights / biases.
    s1 = params["bn1_gamma"] / jnp.sqrt(params["bn1_var"] + eps)
    b1 = params["bn1_beta"] - params["bn1_mean"] * s1
    s2 = params["bn2_gamma"] / jnp.sqrt(params["bn2_var"] + eps)
    b2 = params["bn2_beta"] - params["bn2_mean"] * s2

    w1_mat = (w1.T * s1[None, :]).astype(jnp.float32)     # (C, med)
    w2_mat = (w2.T * s2[None, :]).astype(jnp.float32)     # (med, dim)
    wdw_mat = wdw.T.astype(jnp.float32)                   # (k*k, med), row = kh*k+kw

    # channels-last for lane-dense matmuls / depthwise accumulation
    a = x.transpose(0, 1, 3, 4, 2).reshape(T * B * H * W, C).astype(jnp.float32)

    y1 = spike_pw_bn(a, w1_mat, b1.reshape(1, med).astype(jnp.float32))
    y1 = y1.reshape(T * B, H, W, med)

    y2 = spike_dw_pw_bn(
        y1, wdw_mat, w2_mat, b2.reshape(1, dim_out).astype(jnp.float32), ksize=ksize
    )                                                     # (T*B, H, W, dim)

    # Back to the module's NCHW convention (consumer could take channels-last
    # directly and skip this transpose).
    return y2.reshape(T, B, H, W, dim_out).transpose(0, 1, 4, 2, 3)


# ----------------------------------------------------------------------------
# Pure-JAX reference (same inference semantics) for a sanity check.
# ----------------------------------------------------------------------------
def _sepconv_reference(x, params):
    T, B, C, H, W = x.shape
    eps = 1e-5
    ksize = params["dw_weight"].shape[-1]
    pad = ksize // 2
    med = params["pw1_weight"].shape[0]
    dn = ("NCHW", "OIHW", "NCHW")
    hi = lax.Precision.HIGHEST

    def bn(h, g, be, mu, var):
        inv = g / jnp.sqrt(var + eps)
        return h * inv[None, :, None, None] + (be - mu * inv)[None, :, None, None]

    h = _multispike(x).reshape(T * B, C, H, W)
    h = lax.conv_general_dilated(h, params["pw1_weight"], (1, 1), "VALID",
                                 dimension_numbers=dn, precision=hi)
    h = bn(h, params["bn1_gamma"], params["bn1_beta"],
           params["bn1_mean"], params["bn1_var"])
    h = _multispike(h)
    h = lax.conv_general_dilated(h, params["dw_weight"], (1, 1),
                                 ((pad, pad), (pad, pad)), dimension_numbers=dn,
                                 feature_group_count=med, precision=hi)
    h = lax.conv_general_dilated(h, params["pw2_weight"], (1, 1), "VALID",
                                 dimension_numbers=dn, precision=hi)
    h = bn(h, params["bn2_gamma"], params["bn2_beta"],
           params["bn2_mean"], params["bn2_var"])
    return h.reshape(T, B, -1, H, W)


if __name__ == "__main__":
    key = jax.random.PRNGKey(0)
    T, B, dim, H, W = 2, 2, 4, 16, 16
    expansion, ksize = 2, 7
    med = expansion * dim

    ks = jax.random.split(key, 4)
    x = jax.random.normal(ks[0], (T, B, dim, H, W), dtype=jnp.float32)

    def uinit(k, shape, fan_in):
        bound = 1.0 / (fan_in ** 0.5)
        return jax.random.uniform(k, shape, jnp.float32, -bound, bound)

    params = {
        "pw1_weight": uinit(ks[1], (med, dim, 1, 1), dim),
        "dw_weight":  uinit(ks[2], (med, 1, ksize, ksize), ksize * ksize),
        "pw2_weight": uinit(ks[3], (dim, med, 1, 1), med),
        "bn1_gamma": 1.0 + 0.01 * jnp.arange(med, dtype=jnp.float32),
        "bn1_beta": 0.02 * jnp.arange(med, dtype=jnp.float32),
        "bn1_mean": 0.001 * jnp.arange(med, dtype=jnp.float32),
        "bn1_var": 1.0 + 0.05 * jnp.arange(med, dtype=jnp.float32),
        "bn2_gamma": 1.0 - 0.01 * jnp.arange(dim, dtype=jnp.float32),
        "bn2_beta": -0.01 * jnp.arange(dim, dtype=jnp.float32),
        "bn2_mean": 0.002 * jnp.arange(dim, dtype=jnp.float32),
        "bn2_var": 1.0 + 0.03 * jnp.arange(dim, dtype=jnp.float32),
    }

    out = jax.block_until_ready(sepconv_forward(x, params))
    assert out.shape == (T, B, dim, H, W), out.shape
    assert bool(jnp.all(jnp.isfinite(out)))

    ref = jax.block_until_ready(_sepconv_reference(x, params))
    # mean-abs-error check (robust to rare spike-level flips at quantization
    # boundaries caused by matmul precision differences)
    mean_err = float(jnp.mean(jnp.abs(out - ref)))
    assert mean_err < 5e-3, f"mean abs err {mean_err}"

    print("KERNEL_OK")
</pallas_src>

<mosaic_0001>
module attributes {stable_mosaic.version = 11 : i64} {
  func.func @_spike_pw_bn_kernel(%arg0: i32, %arg1: memref<1024x4xf32, #tpu.memory_space<vmem>>, %arg2: memref<4x8xf32, #tpu.memory_space<vmem>>, %arg3: memref<1x8xf32, #tpu.memory_space<vmem>>, %arg4: memref<1024x8xf32, #tpu.memory_space<vmem>>) attributes {dimension_semantics = [#tpu.dimension_semantics<parallel>], iteration_bounds = array<i64: 1>, scalar_prefetch = 0 : i64, scratch_operands = 0 : i64, tpu.core_type = #tpu.core_type<tc>, window_params = [{transform_indices = @transform_0, window_bounds = array<i64: 1024, 4>}, {pipeline_mode = #tpu.pipeline_mode<synchronous>, transform_indices = @transform_1, window_bounds = array<i64: 4, 8>}, {pipeline_mode = #tpu.pipeline_mode<synchronous>, transform_indices = @transform_2, window_bounds = array<i64: 1, 8>}, {transform_indices = @transform_3, window_bounds = array<i64: 1024, 8>}]} {
    %c0 = arith.constant 0 : index
    %c0_0 = arith.constant 0 : index
    %0 = vector.load %arg1[%c0, %c0_0] : memref<1024x4xf32, #tpu.memory_space<vmem>>, vector<1024x4xf32>
    %cst = arith.constant 4.000000e+00 : f32
    %1 = vector.broadcast %cst : f32 to vector<1024x4xf32>
    %2 = arith.mulf %1, %0 : vector<1024x4xf32>
    %cst_1 = arith.constant 0.000000e+00 : f32
    %cst_2 = arith.constant 4.000000e+00 : f32
    %3 = vector.broadcast %cst_1 : f32 to vector<1024x4xf32>
    %4 = arith.maximumf %3, %2 : vector<1024x4xf32>
    %5 = vector.broadcast %cst_2 : f32 to vector<1024x4xf32>
    %6 = arith.minimumf %5, %4 : vector<1024x4xf32>
    %cst_3 = arith.constant 5.000000e-01 : f32
    %7 = vector.broadcast %cst_3 : f32 to vector<1024x4xf32>
    %8 = arith.addf %6, %7 : vector<1024x4xf32>
    %9 = math.floor %8 : vector<1024x4xf32>
    %cst_4 = arith.constant 2.500000e-01 : f32
    %10 = vector.broadcast %cst_4 : f32 to vector<1024x4xf32>
    %11 = arith.mulf %9, %10 : vector<1024x4xf32>
    %c0_5 = arith.constant 0 : index
    %c0_6 = arith.constant 0 : index
    %12 = vector.load %arg2[%c0_5, %c0_6] : memref<4x8xf32, #tpu.memory_space<vmem>>, vector<4x8xf32>
    %cst_7 = arith.constant dense<0.000000e+00> : vector<1024x8xf32>
    %13 = tpu.matmul %11, %12, %cst_7 {dimension_numbers = #tpu.dot_dimension_numbers<[1], [0], [0], [1], [0, 0, 1, 1], [], []>} : vector<1024x4xf32>, vector<4x8xf32>, vector<1024x8xf32> -> vector<1024x8xf32>
    %c0_8 = arith.constant 0 : index
    %c0_9 = arith.constant 0 : index
    %14 = vector.load %arg3[%c0_8, %c0_9] : memref<1x8xf32, #tpu.memory_space<vmem>>, vector<1x8xf32>
    %15 = vector.broadcast %14 : vector<1x8xf32> to vector<1024x8xf32>
    %16 = arith.addf %13, %15 : vector<1024x8xf32>
    %c0_10 = arith.constant 0 : index
    %c0_11 = arith.constant 0 : index
    %17 = vector.load %arg4[%c0_10, %c0_11] : memref<1024x8xf32, #tpu.memory_space<vmem>>, vector<1024x8xf32>
    tpu.vector_store %arg4[%c0_10, %c0_11], %16 {strides = array<i32>} : memref<1024x8xf32, #tpu.memory_space<vmem>>, vector<1024x8xf32>,
    return
  }
  func.func @transform_0(%arg0: i32) -> (i32, i32) {
    %c0_i32 = arith.constant 0 : i32
    %c0_i32_0 = arith.constant 0 : i32
    return %arg0, %c0_i32 : i32, i32
  }
  func.func @transform_1(%arg0: i32) -> (i32, i32) {
    %c0_i32 = arith.constant 0 : i32
    %c0_i32_0 = arith.constant 0 : i32
    %c0_i32_1 = arith.constant 0 : i32
    return %c0_i32, %c0_i32_0 : i32, i32
  }
  func.func @transform_2(%arg0: i32) -> (i32, i32) {
    %c0_i32 = arith.constant 0 : i32
    %c0_i32_0 = arith.constant 0 : i32
    %c0_i32_1 = arith.constant 0 : i32
    return %c0_i32, %c0_i32_0 : i32, i32
  }
  func.func @transform_3(%arg0: i32) -> (i32, i32) {
    %c0_i32 = arith.constant 0 : i32
    %c0_i32_0 = arith.constant 0 : i32
    return %arg0, %c0_i32 : i32, i32
  }
}

</mosaic_0001>

<bundles_post_ra>
// kernel: tpu_custom_call.1
= control target key start
LH: loop header
LB: loop body
LE: loop exit
PB: predicated region body
PF: predicated region fallthrough
CT: control target
= control target key end

     0   :  { %vm1303_vm0 = vcmask 1043456   ;;  %vm918_vm1 = vcmask 31744   ;;  %vm2012_vm2 = vcmask 64512   ;;  %s3780_s1 = inlined_call_operand.vmem [shape: f32[4,8], index: 1, kind: input, shape index: {}]   ;;  %s3781_s0 = inlined_call_operand.vmem [shape: f32[1024,4], index: 0, kind: input, shape index: {}]   ;;  %s3782_s2 = inlined_call_operand.vmem [shape: f32[1,8], index: 2, kind: input, shape index: {}]   ;;  %s3783_s3 = inlined_call_operand.vmem [shape: f32[1024,8], index: 3, kind: output, shape index: {}]  }
   0x1   :  { %v910_v0 = vld [vmem:[%s3780_s1] sm:$0xf]  ;;  %v15_v5 = vld [vmem:[%s3781_s0 + $0x8] sm:$0xff]  ;;  %v16_v7 = vld [vmem:[%s3781_s0 + $0x10] sm:$0xff] }
   0x2   :  { %v14_v1 = vld [vmem:[%s3781_s0] sm:$0xff]  ;;  %2404 = vmatprep.subr.msk.mxu0 %vm1303_vm0, %v910_v0  ;;  %2598 = vmatprep.subr.msk.mxu1 %vm1303_vm0, %v910_v0  ;;  %v79_v6 = vld [vmem:[%s3781_s0 + $0x208] sm:$0xff]  ;;  %v143_v8 = vmul.f32 4.0, %v15_v5  ;;  %v144_v10 = vmul.f32 4.0, %v16_v7  ;;  %v80_v11 = vld [vmem:[%s3781_s0 + $0x210] sm:$0xff] }
   0x3   :  { %v78_v2 = vld [vmem:[%s3781_s0 + $0x200] sm:$0xff]  ;;  %v142_v3 = vmul.f32 4.0, %v14_v1  ;;  %2405 = vmatpush3.msk.msra.mxu0 %vm1303_vm0, %v910_v0  ;;  %2599 = vmatpush3.msk.msra.mxu1 %vm1303_vm0, %v910_v0  ;;  %v207_v9 = vmul.f32 4.0, %v79_v6  ;;  %v17_v12 = vld [vmem:[%s3781_s0 + $0x18] sm:$0xff]  ;;  %v208_v16 = vmul.f32 4.0, %v80_v11  ;;  %v19_v52 = vld [vmem:[%s3781_s0 + $0x28] sm:$0xff] }
   0x4   :  { %v206_v4 = vmul.f32 4.0, %v78_v2  ;;  %v81_v13 = vld [vmem:[%s3781_s0 + $0x218] sm:$0xff]  ;;  %v145_v17 = vmul.f32 4.0, %v17_v12  ;;  %v271_v18 = vmax.f32 %v143_v8, 0.0  ;;  %v272_v20 = vmax.f32 %v144_v10, 0.0  ;;  %v18_v46 = vld [vmem:[%s3781_s0 + $0x20] sm:$0xff] }
   0x5   :  { %v270_v14 = vmax.f32 %v142_v3, 0.0  ;;  %v335_v19 = vmax.f32 %v207_v9, 0.0  ;;  %v209_v21 = vmul.f32 4.0, %v81_v13  ;;  %v336_v24 = vmax.f32 %v208_v16, 0.0  ;;  %v82_v47 = vld [vmem:[%s3781_s0 + $0x220] sm:$0xff]  ;;  %v83_v53 = vld [vmem:[%s3781_s0 + $0x228] sm:$0xff] }
   0x6   :  { %v334_v15 = vmax.f32 %v206_v4, 0.0  ;;  %v273_v25 = vmax.f32 %v145_v17, 0.0  ;;  %v399_v26 = vmin.f32 %v271_v18, 4.0  ;;  %v400_v28 = vmin.f32 %v272_v20, 4.0  ;;  %v20_v54 = vld [vmem:[%s3781_s0 + $0x30] sm:$0xff]  ;;  %v21_v60 = vld [vmem:[%s3781_s0 + $0x38] sm:$0xff] }
   0x7   :  { %v398_v22 = vmin.f32 %v270_v14, 4.0  ;;  %v463_v27 = vmin.f32 %v335_v19, 4.0  ;;  %v337_v29 = vmax.f32 %v209_v21, 0.0  ;;  %v464_v32 = vmin.f32 %v336_v24, 4.0  ;;  %v84_v59 = vld [vmem:[%s3781_s0 + $0x230] sm:$0xff]  ;;  %v85_v1 = vld [vmem:[%s3781_s0 + $0x238] sm:$0xff] }
   0x8   :  { %v462_v23 = vmin.f32 %v334_v15, 4.0  ;;  %v401_v33 = vmin.f32 %v273_v25, 4.0  ;;  %v527_v34 = vadd.f32 0.5, %v399_v26  ;;  %v528_v36 = vadd.f32 0.5, %v400_v28 }
   0x9   :  { %v526_v30 = vadd.f32 0.5, %v398_v22  ;;  %v591_v35 = vadd.f32 0.5, %v463_v27  ;;  %v465_v37 = vmin.f32 %v337_v29, 4.0  ;;  %v592_v40 = vadd.f32 0.5, %v464_v32 }
   0xa   :  { %v590_v31 = vadd.f32 0.5, %v462_v23  ;;  %v529_v41 = vadd.f32 0.5, %v401_v33  ;;  %v655_v42 = vfloor.f32 %v527_v34  ;;  %v656_v44 = vfloor.f32 %v528_v36 }
   0xb   :  { %v654_v38 = vfloor.f32 %v526_v30  ;;  %v719_v43 = vfloor.f32 %v591_v35  ;;  %v593_v45 = vadd.f32 0.5, %v465_v37  ;;  %v720_v50 = vfloor.f32 %v592_v40 }
   0xc   :  { %v718_v39 = vfloor.f32 %v590_v31  ;;  %v657_v51 = vfloor.f32 %v529_v41  ;;  %v783_v55 = vmul.f32 0.25, %v655_v42  ;;  %v784_v57 = vmul.f32 0.25, %v656_v44  ;;  %v23_v44 = vld [vmem:[%s3781_s0 + $0x48] sm:$0xff] }
   0xd   :  { %v782_v48 = vmul.f32 0.25, %v654_v38  ;;  %v847_v56 = vmul.f32 0.25, %v719_v43  ;;  %v721_v58 = vfloor.f32 %v593_v45  ;;  %v848_v61 = vmul.f32 0.25, %v720_v50  ;;  %v22_v38 = vld [vmem:[%s3781_s0 + $0x40] sm:$0xff]  ;;  %v87_v45 = vld [vmem:[%s3781_s0 + $0x248] sm:$0xff] }
   0xe   :  { %v846_v49 = vmul.f32 0.25, %v718_v39  ;;  %v785_v62 = vmul.f32 0.25, %v657_v51  ;;  %v146_v63 = vmul.f32 4.0, %v18_v46  ;;  %v210_v0 = vmul.f32 4.0, %v82_v47  ;;  %v86_v39 = vld [vmem:[%s3781_s0 + $0x240] sm:$0xff]  ;;  %v24_v46 = vld [vmem:[%s3781_s0 + $0x50] sm:$0xff] }
   0xf   :  { %2406 = vmatprep.mubr.msk.f32.mxu0 %vm918_vm1, %v782_v48  ;;  %v849_v2 = vmul.f32 0.25, %v721_v58  ;;  %v147_v3 = vmul.f32 4.0, %v19_v52  ;;  %v211_v4 = vmul.f32 4.0, %v83_v53  ;;  %v148_v5 = vmul.f32 4.0, %v20_v54  ;;  %v88_v51 = vld [vmem:[%s3781_s0 + $0x250] sm:$0xff]  ;;  %v25_v52 = vld [vmem:[%s3781_s0 + $0x58] sm:$0xff] }
  0x10   :  { %2502 = vmatprep.mubr.msk.f32.mxu1 %vm918_vm1, %v846_v49  ;;  %2407 = vmatmul.mubr.msk.f32.vlgmr.msra.gmra.mrb[0].mxu0 %vm918_vm1, %v783_v55  ;;  %v274_v6 = vmax.f32 %v146_v63, 0.0  ;;  %v338_v7 = vmax.f32 %v210_v0, 0.0  ;;  %v212_v8 = vmul.f32 4.0, %v84_v59  ;;  %v149_v9 = vmul.f32 4.0, %v21_v60 }
  0x11   :  { %2503 = vmatmul.mubr.msk.f32.vlgmr.msra.gmra.mrb[0].mxu1 %vm918_vm1, %v847_v56  ;;  %2409 = vmatprep.mubr.msk.f32.mxu0 %vm918_vm1, %v784_v57  ;;  %v275_v10 = vmax.f32 %v147_v3, 0.0  ;;  %v339_v11 = vmax.f32 %v211_v4, 0.0  ;;  %v276_v12 = vmax.f32 %v148_v5, 0.0  ;;  %v213_v13 = vmul.f32 4.0, %v85_v1  ;;  %v89_v57 = vld [vmem:[%s3781_s0 + $0x258] sm:$0xff] }
  0x12   :  { %2505 = vmatprep.mubr.msk.f32.mxu1 %vm918_vm1, %v848_v61  ;;  %v402_v14 = vmin.f32 %v274_v6, 4.0  ;;  %v466_v15 = vmin.f32 %v338_v7, 4.0  ;;  %v340_v16 = vmax.f32 %v212_v8, 0.0  ;;  %v277_v17 = vmax.f32 %v149_v9, 0.0 }
  0x13   :  { %v403_v18 = vmin.f32 %v275_v10, 4.0  ;;  %v467_v19 = vmin.f32 %v339_v11, 4.0  ;;  %v404_v20 = vmin.f32 %v276_v12, 4.0  ;;  %v341_v21 = vmax.f32 %v213_v13, 0.0 }
  0x14   :  { %2410 = vmatmul.mubr.msk.f32.gmra.mrb[2].mxu0 %vm918_vm1, %v785_v62  ;;  %v530_v22 = vadd.f32 0.5, %v402_v14  ;;  %v594_v23 = vadd.f32 0.5, %v466_v15  ;;  %v468_v24 = vmin.f32 %v340_v16, 4.0  ;;  %v405_v25 = vmin.f32 %v277_v17, 4.0 }
  0x15   :  { %2506 = vmatmul.mubr.msk.f32.gmra.mrb[2].mxu1 %vm918_vm1, %v849_v2  ;;  %v531_v26 = vadd.f32 0.5, %v403_v18  ;;  %v595_v27 = vadd.f32 0.5, %v467_v19  ;;  %v532_v28 = vadd.f32 0.5, %v404_v20  ;;  %v469_v29 = vmin.f32 %v341_v21, 4.0 }
  0x16   :  { %v658_v30 = vfloor.f32 %v530_v22  ;;  %v722_v31 = vfloor.f32 %v594_v23  ;;  %v596_v32 = vadd.f32 0.5, %v468_v24  ;;  %v533_v33 = vadd.f32 0.5, %v405_v25 }
  0x17   :  { %v659_v34 = vfloor.f32 %v531_v26  ;;  %v723_v35 = vfloor.f32 %v595_v27  ;;  %v660_v36 = vfloor.f32 %v532_v28  ;;  %v597_v37 = vadd.f32 0.5, %v469_v29 }
  0x18   :  { %v786_v40 = vmul.f32 0.25, %v658_v30  ;;  %v850_v41 = vmul.f32 0.25, %v722_v31  ;;  %v724_v42 = vfloor.f32 %v596_v32  ;;  %v661_v43 = vfloor.f32 %v533_v33  ;;  %v26_v30 = vld [vmem:[%s3781_s0 + $0x60] sm:$0xff] }
  0x19   :  { %v787_v47 = vmul.f32 0.25, %v659_v34  ;;  %v851_v48 = vmul.f32 0.25, %v723_v35  ;;  %v788_v49 = vmul.f32 0.25, %v660_v36  ;;  %v725_v50 = vfloor.f32 %v597_v37  ;;  %v90_v31 = vld [vmem:[%s3781_s0 + $0x260] sm:$0xff]  ;;  %v27_v36 = vld [vmem:[%s3781_s0 + $0x68] sm:$0xff] }
  0x1a   :  { %2412 = vmatprep.mubr.msk.f32.mxu0 %vm918_vm1, %v786_v40  ;;  %2508 = vmatprep.mubr.msk.f32.mxu1 %vm918_vm1, %v850_v41  ;;  %v852_v53 = vmul.f32 0.25, %v724_v42  ;;  %v789_v54 = vmul.f32 0.25, %v661_v43  ;;  %v150_v55 = vmul.f32 4.0, %v22_v38  ;;  %v214_v56 = vmul.f32 4.0, %v86_v39  ;;  %v91_v37 = vld [vmem:[%s3781_s0 + $0x268] sm:$0xff]  ;;  %v28_v38 = vld [vmem:[%s3781_s0 + $0x70] sm:$0xff] }
  0x1b   :  { %2413 = vmatmul.mubr.msk.f32.gmra.mrb[4].mxu0 %vm918_vm1, %v787_v47  ;;  %2509 = vmatmul.mubr.msk.f32.gmra.mrb[4].mxu1 %vm918_vm1, %v851_v48  ;;  %v853_v58 = vmul.f32 0.25, %v725_v50  ;;  %v151_v59 = vmul.f32 4.0, %v23_v44  ;;  %v215_v60 = vmul.f32 4.0, %v87_v45  ;;  %v152_v61 = vmul.f32 4.0, %v24_v46  ;;  %v92_v43 = vld [vmem:[%s3781_s0 + $0x270] sm:$0xff]  ;;  %v29_v44 = vld [vmem:[%s3781_s0 + $0x78] sm:$0xff] }
  0x1c   :  { %2415 = vmatprep.mubr.msk.f32.mxu0 %vm918_vm1, %v788_v49  ;;  %2511 = vmatprep.mubr.msk.f32.mxu1 %vm918_vm1, %v852_v53  ;;  %v278_v62 = vmax.f32 %v150_v55, 0.0  ;;  %v342_v63 = vmax.f32 %v214_v56, 0.0  ;;  %v216_v0 = vmul.f32 4.0, %v88_v51  ;;  %v153_v1 = vmul.f32 4.0, %v25_v52  ;;  %v93_v49 = vld [vmem:[%s3781_s0 + $0x278] sm:$0xff] }
  0x1d   :  { %v279_v2 = vmax.f32 %v151_v59, 0.0  ;;  %v343_v3 = vmax.f32 %v215_v60, 0.0  ;;  %v280_v4 = vmax.f32 %v152_v61, 0.0  ;;  %v217_v5 = vmul.f32 4.0, %v89_v57 }
  0x1e   :  { %v406_v6 = vmin.f32 %v278_v62, 4.0  ;;  %v470_v7 = vmin.f32 %v342_v63, 4.0  ;;  %v344_v8 = vmax.f32 %v216_v0, 0.0  ;;  %v281_v9 = vmax.f32 %v153_v1, 0.0 }
  0x1f   :  { %2416 = vmatmul.mubr.msk.f32.gmra.mrb[6].mxu0 %vm918_vm1, %v789_v54  ;;  %2512 = vmatmul.mubr.msk.f32.gmra.mrb[6].mxu1 %vm918_vm1, %v853_v58  ;;  %v407_v10 = vmin.f32 %v279_v2, 4.0  ;;  %v471_v11 = vmin.f32 %v343_v3, 4.0  ;;  %v408_v12 = vmin.f32 %v280_v4, 4.0  ;;  %v345_v13 = vmax.f32 %v217_v5, 0.0 }
  0x20   :  { %v534_v14 = vadd.f32 0.5, %v406_v6  ;;  %v598_v15 = vadd.f32 0.5, %v470_v7  ;;  %v472_v16 = vmin.f32 %v344_v8, 4.0  ;;  %v409_v17 = vmin.f32 %v281_v9, 4.0 }
  0x21   :  { %v535_v18 = vadd.f32 0.5, %v407_v10  ;;  %v599_v19 = vadd.f32 0.5, %v471_v11  ;;  %v536_v20 = vadd.f32 0.5, %v408_v12  ;;  %v473_v21 = vmin.f32 %v345_v13, 4.0 }
  0x22   :  { %v662_v22 = vfloor.f32 %v534_v14  ;;  %v726_v23 = vfloor.f32 %v598_v15  ;;  %v600_v24 = vadd.f32 0.5, %v472_v16  ;;  %v537_v25 = vadd.f32 0.5, %v409_v17 }
  0x23   :  { %v663_v26 = vfloor.f32 %v535_v18  ;;  %v727_v27 = vfloor.f32 %v599_v19  ;;  %v664_v28 = vfloor.f32 %v536_v20  ;;  %v601_v29 = vadd.f32 0.5, %v473_v21 }
  0x24   :  { %v790_v32 = vmul.f32 0.25, %v662_v22  ;;  %v854_v33 = vmul.f32 0.25, %v726_v23  ;;  %v728_v34 = vfloor.f32 %v600_v24  ;;  %v665_v35 = vfloor.f32 %v537_v25  ;;  %v30_v22 = vld [vmem:[%s3781_s0 + $0x80] sm:$0xff] }
  0x25   :  { %v791_v39 = vmul.f32 0.25, %v663_v26  ;;  %v855_v40 = vmul.f32 0.25, %v727_v27  ;;  %v792_v41 = vmul.f32 0.25, %v664_v28  ;;  %v729_v42 = vfloor.f32 %v601_v29  ;;  %v94_v23 = vld [vmem:[%s3781_s0 + $0x280] sm:$0xff]  ;;  %v31_v28 = vld [vmem:[%s3781_s0 + $0x88] sm:$0xff] }
  0x26   :  { %2418 = vmatprep.mubr.msk.f32.mxu0 %vm918_vm1, %v790_v32  ;;  %2514 = vmatprep.mubr.msk.f32.mxu1 %vm918_vm1, %v854_v33  ;;  %v856_v45 = vmul.f32 0.25, %v728_v34  ;;  %v793_v46 = vmul.f32 0.25, %v665_v35  ;;  %v154_v47 = vmul.f32 4.0, %v26_v30  ;;  %v218_v48 = vmul.f32 4.0, %v90_v31  ;;  %v95_v29 = vld [vmem:[%s3781_s0 + $0x288] sm:$0xff]  ;;  %v32_v30 = vld [vmem:[%s3781_s0 + $0x90] sm:$0xff] }
  0x27   :  { %2419 = vmatmul.mubr.msk.f32.gmra.mrb[8].mxu0 %vm918_vm1, %v791_v39  ;;  %2515 = vmatmul.mubr.msk.f32.gmra.mrb[8].mxu1 %vm918_vm1, %v855_v40  ;;  %v857_v50 = vmul.f32 0.25, %v729_v42  ;;  %v155_v51 = vmul.f32 4.0, %v27_v36  ;;  %v219_v52 = vmul.f32 4.0, %v91_v37  ;;  %v156_v53 = vmul.f32 4.0, %v28_v38  ;;  %v96_v35 = vld [vmem:[%s3781_s0 + $0x290] sm:$0xff]  ;;  %v33_v36 = vld [vmem:[%s3781_s0 + $0x98] sm:$0xff] }
  0x28   :  { %2421 = vmatprep.mubr.msk.f32.mxu0 %vm918_vm1, %v792_v41  ;;  %2517 = vmatprep.mubr.msk.f32.mxu1 %vm918_vm1, %v856_v45  ;;  %v282_v54 = vmax.f32 %v154_v47, 0.0  ;;  %v346_v55 = vmax.f32 %v218_v48, 0.0  ;;  %v220_v56 = vmul.f32 4.0, %v92_v43  ;;  %v157_v57 = vmul.f32 4.0, %v29_v44  ;;  %v97_v41 = vld [vmem:[%s3781_s0 + $0x298] sm:$0xff] }
  0x29   :  { %v283_v58 = vmax.f32 %v155_v51, 0.0  ;;  %v347_v59 = vmax.f32 %v219_v52, 0.0  ;;  %v284_v60 = vmax.f32 %v156_v53, 0.0  ;;  %v221_v61 = vmul.f32 4.0, %v93_v49 }
  0x2a   :  { %v410_v62 = vmin.f32 %v282_v54, 4.0  ;;  %v474_v63 = vmin.f32 %v346_v55, 4.0  ;;  %v348_v0 = vmax.f32 %v220_v56, 0.0  ;;  %v285_v1 = vmax.f32 %v157_v57, 0.0 }
  0x2b   :  { %2422 = vmatmul.mubr.msk.f32.gmra.mrb[10].mxu0 %vm918_vm1, %v793_v46  ;;  %2518 = vmatmul.mubr.msk.f32.gmra.mrb[10].mxu1 %vm918_vm1, %v857_v50  ;;  %v411_v2 = vmin.f32 %v283_v58, 4.0  ;;  %v475_v3 = vmin.f32 %v347_v59, 4.0  ;;  %v412_v4 = vmin.f32 %v284_v60, 4.0  ;;  %v349_v5 = vmax.f32 %v221_v61, 0.0 }
  0x2c   :  { %v538_v6 = vadd.f32 0.5, %v410_v62  ;;  %v602_v7 = vadd.f32 0.5, %v474_v63  ;;  %v476_v8 = vmin.f32 %v348_v0, 4.0  ;;  %v413_v9 = vmin.f32 %v285_v1, 4.0 }
  0x2d   :  { %v539_v10 = vadd.f32 0.5, %v411_v2  ;;  %v603_v11 = vadd.f32 0.5, %v475_v3  ;;  %v540_v12 = vadd.f32 0.5, %v412_v4  ;;  %v477_v13 = vmin.f32 %v349_v5, 4.0 }
  0x2e   :  { %v666_v14 = vfloor.f32 %v538_v6  ;;  %v730_v15 = vfloor.f32 %v602_v7  ;;  %v604_v16 = vadd.f32 0.5, %v476_v8  ;;  %v541_v17 = vadd.f32 0.5, %v413_v9 }
  0x2f   :  { %v667_v18 = vfloor.f32 %v539_v10  ;;  %v731_v19 = vfloor.f32 %v603_v11  ;;  %v668_v20 = vfloor.f32 %v540_v12  ;;  %v605_v21 = vadd.f32 0.5, %v477_v13 }
  0x30   :  { %v794_v24 = vmul.f32 0.25, %v666_v14  ;;  %v858_v25 = vmul.f32 0.25, %v730_v15  ;;  %v732_v26 = vfloor.f32 %v604_v16  ;;  %v669_v27 = vfloor.f32 %v541_v17  ;;  %v34_v14 = vld [vmem:[%s3781_s0 + $0xa0] sm:$0xff] }
  0x31   :  { %v795_v31 = vmul.f32 0.25, %v667_v18  ;;  %v859_v32 = vmul.f32 0.25, %v731_v19  ;;  %v796_v33 = vmul.f32 0.25, %v668_v20  ;;  %v733_v34 = vfloor.f32 %v605_v21  ;;  %v98_v15 = vld [vmem:[%s3781_s0 + $0x2a0] sm:$0xff]  ;;  %v35_v20 = vld [vmem:[%s3781_s0 + $0xa8] sm:$0xff] }
  0x32   :  { %2424 = vmatprep.mubr.msk.f32.mxu0 %vm918_vm1, %v794_v24  ;;  %2520 = vmatprep.mubr.msk.f32.mxu1 %vm918_vm1, %v858_v25  ;;  %v860_v37 = vmul.f32 0.25, %v732_v26  ;;  %v797_v38 = vmul.f32 0.25, %v669_v27  ;;  %v158_v39 = vmul.f32 4.0, %v30_v22  ;;  %v222_v40 = vmul.f32 4.0, %v94_v23  ;;  %v99_v21 = vld [vmem:[%s3781_s0 + $0x2a8] sm:$0xff]  ;;  %v36_v22 = vld [vmem:[%s3781_s0 + $0xb0] sm:$0xff] }
  0x33   :  { %2425 = vmatmul.mubr.msk.f32.gmra.mrb[12].mxu0 %vm918_vm1, %v795_v31  ;;  %2521 = vmatmul.mubr.msk.f32.gmra.mrb[12].mxu1 %vm918_vm1, %v859_v32  ;;  %v861_v42 = vmul.f32 0.25, %v733_v34  ;;  %v159_v43 = vmul.f32 4.0, %v31_v28  ;;  %v223_v44 = vmul.f32 4.0, %v95_v29  ;;  %v160_v45 = vmul.f32 4.0, %v32_v30  ;;  %v100_v27 = vld [vmem:[%s3781_s0 + $0x2b0] sm:$0xff]  ;;  %v37_v28 = vld [vmem:[%s3781_s0 + $0xb8] sm:$0xff] }
  0x34   :  { %2427 = vmatprep.mubr.msk.f32.mxu0 %vm918_vm1, %v796_v33  ;;  %2523 = vmatprep.mubr.msk.f32.mxu1 %vm918_vm1, %v860_v37  ;;  %v286_v46 = vmax.f32 %v158_v39, 0.0  ;;  %v350_v47 = vmax.f32 %v222_v40, 0.0  ;;  %v224_v48 = vmul.f32 4.0, %v96_v35  ;;  %v161_v49 = vmul.f32 4.0, %v33_v36  ;;  %v101_v33 = vld [vmem:[%s3781_s0 + $0x2b8] sm:$0xff] }
  0x35   :  { %v287_v50 = vmax.f32 %v159_v43, 0.0  ;;  %v351_v51 = vmax.f32 %v223_v44, 0.0  ;;  %v288_v52 = vmax.f32 %v160_v45, 0.0  ;;  %v225_v53 = vmul.f32 4.0, %v97_v41 }
  0x36   :  { %v414_v54 = vmin.f32 %v286_v46, 4.0  ;;  %v478_v55 = vmin.f32 %v350_v47, 4.0  ;;  %v352_v56 = vmax.f32 %v224_v48, 0.0  ;;  %v289_v57 = vmax.f32 %v161_v49, 0.0 }
  0x37   :  { %2428 = vmatmul.mubr.msk.f32.gmra.mrb[14].mxu0 %vm918_vm1, %v797_v38  ;;  %2524 = vmatmul.mubr.msk.f32.gmra.mrb[14].mxu1 %vm918_vm1, %v861_v42  ;;  %v415_v58 = vmin.f32 %v287_v50, 4.0  ;;  %v479_v59 = vmin.f32 %v351_v51, 4.0  ;;  %v416_v60 = vmin.f32 %v288_v52, 4.0  ;;  %v353_v61 = vmax.f32 %v225_v53, 0.0 }
  0x38   :  { %v542_v62 = vadd.f32 0.5, %v414_v54  ;;  %v606_v63 = vadd.f32 0.5, %v478_v55  ;;  %v480_v0 = vmin.f32 %v352_v56, 4.0  ;;  %v417_v1 = vmin.f32 %v289_v57, 4.0 }
  0x39   :  { %v543_v2 = vadd.f32 0.5, %v415_v58  ;;  %v607_v3 = vadd.f32 0.5, %v479_v59  ;;  %v544_v4 = vadd.f32 0.5, %v416_v60  ;;  %v481_v5 = vmin.f32 %v353_v61, 4.0 }
  0x3a   :  { %v670_v6 = vfloor.f32 %v542_v62  ;;  %v734_v7 = vfloor.f32 %v606_v63  ;;  %v608_v8 = vadd.f32 0.5, %v480_v0  ;;  %v545_v9 = vadd.f32 0.5, %v417_v1 }
  0x3b   :  { %v671_v10 = vfloor.f32 %v543_v2  ;;  %v735_v11 = vfloor.f32 %v607_v3  ;;  %v672_v12 = vfloor.f32 %v544_v4  ;;  %v609_v13 = vadd.f32 0.5, %v481_v5 }
  0x3c   :  { %v798_v16 = vmul.f32 0.25, %v670_v6  ;;  %v862_v17 = vmul.f32 0.25, %v734_v7  ;;  %v736_v18 = vfloor.f32 %v608_v8  ;;  %v673_v19 = vfloor.f32 %v545_v9  ;;  %v38_v6 = vld [vmem:[%s3781_s0 + $0xc0] sm:$0xff] }
  0x3d   :  { %v799_v23 = vmul.f32 0.25, %v671_v10  ;;  %v863_v24 = vmul.f32 0.25, %v735_v11  ;;  %v800_v25 = vmul.f32 0.25, %v672_v12  ;;  %v737_v26 = vfloor.f32 %v609_v13  ;;  %v102_v7 = vld [vmem:[%s3781_s0 + $0x2c0] sm:$0xff]  ;;  %v39_v12 = vld [vmem:[%s3781_s0 + $0xc8] sm:$0xff] }
  0x3e   :  { %2430 = vmatprep.mubr.msk.f32.mxu0 %vm918_vm1, %v798_v16  ;;  %2526 = vmatprep.mubr.msk.f32.mxu1 %vm918_vm1, %v862_v17  ;;  %v864_v29 = vmul.f32 0.25, %v736_v18  ;;  %v801_v30 = vmul.f32 0.25, %v673_v19  ;;  %v162_v31 = vmul.f32 4.0, %v34_v14  ;;  %v226_v32 = vmul.f32 4.0, %v98_v15  ;;  %v103_v13 = vld [vmem:[%s3781_s0 + $0x2c8] sm:$0xff]  ;;  %v40_v14 = vld [vmem:[%s3781_s0 + $0xd0] sm:$0xff] }
  0x3f   :  { %2431 = vmatmul.mubr.msk.f32.gmra.mrb[16].mxu0 %vm918_vm1, %v799_v23  ;;  %2527 = vmatmul.mubr.msk.f32.gmra.mrb[16].mxu1 %vm918_vm1, %v863_v24  ;;  %v865_v34 = vmul.f32 0.25, %v737_v26  ;;  %v163_v35 = vmul.f32 4.0, %v35_v20  ;;  %v227_v36 = vmul.f32 4.0, %v99_v21  ;;  %v164_v37 = vmul.f32 4.0, %v36_v22  ;;  %v104_v19 = vld [vmem:[%s3781_s0 + $0x2d0] sm:$0xff]  ;;  %v41_v20 = vld [vmem:[%s3781_s0 + $0xd8] sm:$0xff] }
  0x40   :  { %2433 = vmatprep.mubr.msk.f32.mxu0 %vm918_vm1, %v800_v25  ;;  %2529 = vmatprep.mubr.msk.f32.mxu1 %vm918_vm1, %v864_v29  ;;  %v290_v38 = vmax.f32 %v162_v31, 0.0  ;;  %v354_v39 = vmax.f32 %v226_v32, 0.0  ;;  %v228_v40 = vmul.f32 4.0, %v100_v27  ;;  %v165_v41 = vmul.f32 4.0, %v37_v28  ;;  %v105_v25 = vld [vmem:[%s3781_s0 + $0x2d8] sm:$0xff] }
  0x41   :  { %v291_v42 = vmax.f32 %v163_v35, 0.0  ;;  %v355_v43 = vmax.f32 %v227_v36, 0.0  ;;  %v292_v44 = vmax.f32 %v164_v37, 0.0  ;;  %v229_v45 = vmul.f32 4.0, %v101_v33 }
  0x42   :  { %v418_v46 = vmin.f32 %v290_v38, 4.0  ;;  %v482_v47 = vmin.f32 %v354_v39, 4.0  ;;  %v356_v48 = vmax.f32 %v228_v40, 0.0  ;;  %v293_v49 = vmax.f32 %v165_v41, 0.0 }
  0x43   :  { %2434 = vmatmul.mubr.msk.f32.gmra.mrb[18].mxu0 %vm918_vm1, %v801_v30  ;;  %2530 = vmatmul.mubr.msk.f32.gmra.mrb[18].mxu1 %vm918_vm1, %v865_v34  ;;  %v419_v50 = vmin.f32 %v291_v42, 4.0  ;;  %v483_v51 = vmin.f32 %v355_v43, 4.0  ;;  %v420_v52 = vmin.f32 %v292_v44, 4.0  ;;  %v357_v53 = vmax.f32 %v229_v45, 0.0 }
  0x44   :  { %v546_v54 = vadd.f32 0.5, %v418_v46  ;;  %v610_v55 = vadd.f32 0.5, %v482_v47  ;;  %v484_v56 = vmin.f32 %v356_v48, 4.0  ;;  %v421_v57 = vmin.f32 %v293_v49, 4.0 }
  0x45   :  { %v547_v58 = vadd.f32 0.5, %v419_v50  ;;  %v611_v59 = vadd.f32 0.5, %v483_v51  ;;  %v548_v60 = vadd.f32 0.5, %v420_v52  ;;  %v485_v61 = vmin.f32 %v357_v53, 4.0 }
  0x46   :  { %v674_v62 = vfloor.f32 %v546_v54  ;;  %v738_v63 = vfloor.f32 %v610_v55  ;;  %v612_v0 = vadd.f32 0.5, %v484_v56  ;;  %v549_v1 = vadd.f32 0.5, %v421_v57 }
  0x47   :  { %v675_v2 = vfloor.f32 %v547_v58  ;;  %v739_v3 = vfloor.f32 %v611_v59  ;;  %v676_v4 = vfloor.f32 %v548_v60  ;;  %v613_v5 = vadd.f32 0.5, %v485_v61 }
  0x48   :  { %v802_v8 = vmul.f32 0.25, %v674_v62  ;;  %v866_v9 = vmul.f32 0.25, %v738_v63  ;;  %v740_v10 = vfloor.f32 %v612_v0  ;;  %v677_v11 = vfloor.f32 %v549_v1  ;;  %v42_v62 = vld [vmem:[%s3781_s0 + $0xe0] sm:$0xff] }
  0x49   :  { %v803_v15 = vmul.f32 0.25, %v675_v2  ;;  %v867_v16 = vmul.f32 0.25, %v739_v3  ;;  %v804_v17 = vmul.f32 0.25, %v676_v4  ;;  %v741_v18 = vfloor.f32 %v613_v5  ;;  %v106_v63 = vld [vmem:[%s3781_s0 + $0x2e0] sm:$0xff]  ;;  %v43_v4 = vld [vmem:[%s3781_s0 + $0xe8] sm:$0xff] }
  0x4a   :  { %2436 = vmatprep.mubr.msk.f32.mxu0 %vm918_vm1, %v802_v8  ;;  %2532 = vmatprep.mubr.msk.f32.mxu1 %vm918_vm1, %v866_v9  ;;  %v868_v21 = vmul.f32 0.25, %v740_v10  ;;  %v805_v22 = vmul.f32 0.25, %v677_v11  ;;  %v166_v23 = vmul.f32 4.0, %v38_v6  ;;  %v230_v24 = vmul.f32 4.0, %v102_v7  ;;  %v107_v5 = vld [vmem:[%s3781_s0 + $0x2e8] sm:$0xff]  ;;  %v44_v6 = vld [vmem:[%s3781_s0 + $0xf0] sm:$0xff] }
  0x4b   :  { %2437 = vmatmul.mubr.msk.f32.gmra.mrb[20].mxu0 %vm918_vm1, %v803_v15  ;;  %2533 = vmatmul.mubr.msk.f32.gmra.mrb[20].mxu1 %vm918_vm1, %v867_v16  ;;  %v869_v26 = vmul.f32 0.25, %v741_v18  ;;  %v167_v27 = vmul.f32 4.0, %v39_v12  ;;  %v231_v28 = vmul.f32 4.0, %v103_v13  ;;  %v168_v29 = vmul.f32 4.0, %v40_v14  ;;  %v108_v11 = vld [vmem:[%s3781_s0 + $0x2f0] sm:$0xff]  ;;  %v45_v12 = vld [vmem:[%s3781_s0 + $0xf8] sm:$0xff] }
  0x4c   :  { %2439 = vmatprep.mubr.msk.f32.mxu0 %vm918_vm1, %v804_v17  ;;  %2535 = vmatprep.mubr.msk.f32.mxu1 %vm918_vm1, %v868_v21  ;;  %v294_v30 = vmax.f32 %v166_v23, 0.0  ;;  %v358_v31 = vmax.f32 %v230_v24, 0.0  ;;  %v232_v32 = vmul.f32 4.0, %v104_v19  ;;  %v169_v33 = vmul.f32 4.0, %v41_v20  ;;  %v109_v17 = vld [vmem:[%s3781_s0 + $0x2f8] sm:$0xff] }
  0x4d   :  { %v295_v34 = vmax.f32 %v167_v27, 0.0  ;;  %v359_v35 = vmax.f32 %v231_v28, 0.0  ;;  %v296_v36 = vmax.f32 %v168_v29, 0.0  ;;  %v233_v37 = vmul.f32 4.0, %v105_v25 }
  0x4e   :  { %v422_v38 = vmin.f32 %v294_v30, 4.0  ;;  %v486_v39 = vmin.f32 %v358_v31, 4.0  ;;  %v360_v40 = vmax.f32 %v232_v32, 0.0  ;;  %v297_v41 = vmax.f32 %v169_v33, 0.0 }
  0x4f   :  { %2440 = vmatmul.mubr.msk.f32.gmra.mrb[22].mxu0 %vm918_vm1, %v805_v22  ;;  %2536 = vmatmul.mubr.msk.f32.gmra.mrb[22].mxu1 %vm918_vm1, %v869_v26  ;;  %v423_v42 = vmin.f32 %v295_v34, 4.0  ;;  %v487_v43 = vmin.f32 %v359_v35, 4.0  ;;  %v424_v44 = vmin.f32 %v296_v36, 4.0  ;;  %v361_v45 = vmax.f32 %v233_v37, 0.0 }
  0x50   :  { %v550_v46 = vadd.f32 0.5, %v422_v38  ;;  %v614_v47 = vadd.f32 0.5, %v486_v39  ;;  %v488_v48 = vmin.f32 %v360_v40, 4.0  ;;  %v425_v49 = vmin.f32 %v297_v41, 4.0 }
  0x51   :  { %v551_v50 = vadd.f32 0.5, %v423_v42  ;;  %v615_v51 = vadd.f32 0.5, %v487_v43  ;;  %v552_v52 = vadd.f32 0.5, %v424_v44  ;;  %v489_v53 = vmin.f32 %v361_v45, 4.0 }
  0x52   :  { %v678_v54 = vfloor.f32 %v550_v46  ;;  %v742_v55 = vfloor.f32 %v614_v47  ;;  %v616_v56 = vadd.f32 0.5, %v488_v48  ;;  %v553_v57 = vadd.f32 0.5, %v425_v49 }
  0x53   :  { %v679_v58 = vfloor.f32 %v551_v50  ;;  %v743_v59 = vfloor.f32 %v615_v51  ;;  %v680_v60 = vfloor.f32 %v552_v52  ;;  %v617_v61 = vadd.f32 0.5, %v489_v53 }
  0x54   :  { %v806_v0 = vmul.f32 0.25, %v678_v54  ;;  %v870_v1 = vmul.f32 0.25, %v742_v55  ;;  %v744_v2 = vfloor.f32 %v616_v56  ;;  %v681_v3 = vfloor.f32 %v553_v57  ;;  %v46_v54 = vld [vmem:[%s3781_s0 + $0x100] sm:$0xff] }
  0x55   :  { %v807_v7 = vmul.f32 0.25, %v679_v58  ;;  %v871_v8 = vmul.f32 0.25, %v743_v59  ;;  %v808_v9 = vmul.f32 0.25, %v680_v60  ;;  %v745_v10 = vfloor.f32 %v617_v61  ;;  %v110_v55 = vld [vmem:[%s3781_s0 + $0x300] sm:$0xff]  ;;  %v47_v60 = vld [vmem:[%s3781_s0 + $0x108] sm:$0xff] }
  0x56   :  { %2442 = vmatprep.mubr.msk.f32.mxu0 %vm918_vm1, %v806_v0  ;;  %2538 = vmatprep.mubr.msk.f32.mxu1 %vm918_vm1, %v870_v1  ;;  %v872_v13 = vmul.f32 0.25, %v744_v2  ;;  %v809_v14 = vmul.f32 0.25, %v681_v3  ;;  %v170_v15 = vmul.f32 4.0, %v42_v62  ;;  %v234_v16 = vmul.f32 4.0, %v106_v63  ;;  %v111_v61 = vld [vmem:[%s3781_s0 + $0x308] sm:$0xff]  ;;  %v48_v62 = vld [vmem:[%s3781_s0 + $0x110] sm:$0xff] }
  0x57   :  { %2443 = vmatmul.mubr.msk.f32.gmra.mrb[24].mxu0 %vm918_vm1, %v807_v7  ;;  %2539 = vmatmul.mubr.msk.f32.gmra.mrb[24].mxu1 %vm918_vm1, %v871_v8  ;;  %v873_v18 = vmul.f32 0.25, %v745_v10  ;;  %v171_v19 = vmul.f32 4.0, %v43_v4  ;;  %v235_v20 = vmul.f32 4.0, %v107_v5  ;;  %v172_v21 = vmul.f32 4.0, %v44_v6  ;;  %v112_v3 = vld [vmem:[%s3781_s0 + $0x310] sm:$0xff]  ;;  %v49_v4 = vld [vmem:[%s3781_s0 + $0x118] sm:$0xff] }
  0x58   :  { %2445 = vmatprep.mubr.msk.f32.mxu0 %vm918_vm1, %v808_v9  ;;  %2541 = vmatprep.mubr.msk.f32.mxu1 %vm918_vm1, %v872_v13  ;;  %v298_v22 = vmax.f32 %v170_v15, 0.0  ;;  %v362_v23 = vmax.f32 %v234_v16, 0.0  ;;  %v236_v24 = vmul.f32 4.0, %v108_v11  ;;  %v173_v25 = vmul.f32 4.0, %v45_v12  ;;  %v113_v9 = vld [vmem:[%s3781_s0 + $0x318] sm:$0xff] }
  0x59   :  { %v299_v26 = vmax.f32 %v171_v19, 0.0  ;;  %v363_v27 = vmax.f32 %v235_v20, 0.0  ;;  %v300_v28 = vmax.f32 %v172_v21, 0.0  ;;  %v237_v29 = vmul.f32 4.0, %v109_v17 }
  0x5a   :  { %v426_v30 = vmin.f32 %v298_v22, 4.0  ;;  %v490_v31 = vmin.f32 %v362_v23, 4.0  ;;  %v364_v32 = vmax.f32 %v236_v24, 0.0  ;;  %v301_v33 = vmax.f32 %v173_v25, 0.0 }
  0x5b   :  { %2446 = vmatmul.mubr.msk.f32.gmra.mrb[26].mxu0 %vm918_vm1, %v809_v14  ;;  %2542 = vmatmul.mubr.msk.f32.gmra.mrb[26].mxu1 %vm918_vm1, %v873_v18  ;;  %v427_v34 = vmin.f32 %v299_v26, 4.0  ;;  %v491_v35 = vmin.f32 %v363_v27, 4.0  ;;  %v428_v36 = vmin.f32 %v300_v28, 4.0  ;;  %v365_v37 = vmax.f32 %v237_v29, 0.0 }
  0x5c   :  { %v554_v38 = vadd.f32 0.5, %v426_v30  ;;  %v618_v39 = vadd.f32 0.5, %v490_v31  ;;  %v492_v40 = vmin.f32 %v364_v32, 4.0  ;;  %v429_v41 = vmin.f32 %v301_v33, 4.0 }
  0x5d   :  { %v555_v42 = vadd.f32 0.5, %v427_v34  ;;  %v619_v43 = vadd.f32 0.5, %v491_v35  ;;  %v556_v44 = vadd.f32 0.5, %v428_v36  ;;  %v493_v45 = vmin.f32 %v365_v37, 4.0 }
  0x5e   :  { %v682_v46 = vfloor.f32 %v554_v38  ;;  %v746_v47 = vfloor.f32 %v618_v39  ;;  %v620_v48 = vadd.f32 0.5, %v492_v40  ;;  %v557_v49 = vadd.f32 0.5, %v429_v41 }
  0x5f   :  { %v683_v50 = vfloor.f32 %v555_v42  ;;  %v747_v51 = vfloor.f32 %v619_v43  ;;  %v684_v52 = vfloor.f32 %v556_v44  ;;  %v621_v53 = vadd.f32 0.5, %v493_v45 }
  0x60   :  { %v810_v56 = vmul.f32 0.25, %v682_v46  ;;  %v874_v57 = vmul.f32 0.25, %v746_v47  ;;  %v748_v58 = vfloor.f32 %v620_v48  ;;  %v685_v59 = vfloor.f32 %v557_v49  ;;  %v50_v46 = vld [vmem:[%s3781_s0 + $0x120] sm:$0xff] }
  0x61   :  { %v811_v63 = vmul.f32 0.25, %v683_v50  ;;  %v875_v0 = vmul.f32 0.25, %v747_v51  ;;  %v812_v1 = vmul.f32 0.25, %v684_v52  ;;  %v749_v2 = vfloor.f32 %v621_v53  ;;  %v114_v47 = vld [vmem:[%s3781_s0 + $0x320] sm:$0xff]  ;;  %v51_v52 = vld [vmem:[%s3781_s0 + $0x128] sm:$0xff] }
  0x62   :  { %2448 = vmatprep.mubr.msk.f32.mxu0 %vm918_vm1, %v810_v56  ;;  %2544 = vmatprep.mubr.msk.f32.mxu1 %vm918_vm1, %v874_v57  ;;  %v876_v5 = vmul.f32 0.25, %v748_v58  ;;  %v813_v6 = vmul.f32 0.25, %v685_v59  ;;  %v174_v7 = vmul.f32 4.0, %v46_v54  ;;  %v238_v8 = vmul.f32 4.0, %v110_v55  ;;  %v115_v53 = vld [vmem:[%s3781_s0 + $0x328] sm:$0xff]  ;;  %v52_v54 = vld [vmem:[%s3781_s0 + $0x130] sm:$0xff] }
  0x63   :  { %2449 = vmatmul.mubr.msk.f32.gmra.mrb[28].mxu0 %vm918_vm1, %v811_v63  ;;  %2545 = vmatmul.mubr.msk.f32.gmra.mrb[28].mxu1 %vm918_vm1, %v875_v0  ;;  %v877_v10 = vmul.f32 0.25, %v749_v2  ;;  %v175_v11 = vmul.f32 4.0, %v47_v60  ;;  %v239_v12 = vmul.f32 4.0, %v111_v61  ;;  %v176_v13 = vmul.f32 4.0, %v48_v62  ;;  %v116_v59 = vld [vmem:[%s3781_s0 + $0x330] sm:$0xff]  ;;  %v53_v60 = vld [vmem:[%s3781_s0 + $0x138] sm:$0xff] }
  0x64   :  { %2451 = vmatprep.mubr.msk.f32.mxu0 %vm918_vm1, %v812_v1  ;;  %2547 = vmatprep.mubr.msk.f32.mxu1 %vm918_vm1, %v876_v5  ;;  %v302_v14 = vmax.f32 %v174_v7, 0.0  ;;  %v366_v15 = vmax.f32 %v238_v8, 0.0  ;;  %v240_v16 = vmul.f32 4.0, %v112_v3  ;;  %v177_v17 = vmul.f32 4.0, %v49_v4  ;;  %v117_v1 = vld [vmem:[%s3781_s0 + $0x338] sm:$0xff] }
  0x65   :  { %v303_v18 = vmax.f32 %v175_v11, 0.0  ;;  %v367_v19 = vmax.f32 %v239_v12, 0.0  ;;  %v304_v20 = vmax.f32 %v176_v13, 0.0  ;;  %v241_v21 = vmul.f32 4.0, %v113_v9 }
  0x66   :  { %v430_v22 = vmin.f32 %v302_v14, 4.0  ;;  %v494_v23 = vmin.f32 %v366_v15, 4.0  ;;  %v368_v24 = vmax.f32 %v240_v16, 0.0  ;;  %v305_v25 = vmax.f32 %v177_v17, 0.0 }
  0x67   :  { %2452 = vmatmul.mubr.msk.f32.gmra.mrb[30].mxu0 %vm918_vm1, %v813_v6  ;;  %2548 = vmatmul.mubr.msk.f32.gmra.mrb[30].mxu1 %vm918_vm1, %v877_v10  ;;  %v431_v26 = vmin.f32 %v303_v18, 4.0  ;;  %v495_v27 = vmin.f32 %v367_v19, 4.0  ;;  %v432_v28 = vmin.f32 %v304_v20, 4.0  ;;  %v369_v29 = vmax.f32 %v241_v21, 0.0 }
  0x68   :  { %v558_v30 = vadd.f32 0.5, %v430_v22  ;;  %v622_v31 = vadd.f32 0.5, %v494_v23  ;;  %v496_v32 = vmin.f32 %v368_v24, 4.0  ;;  %v433_v33 = vmin.f32 %v305_v25, 4.0 }
  0x69   :  { %v559_v34 = vadd.f32 0.5, %v431_v26  ;;  %v623_v35 = vadd.f32 0.5, %v495_v27  ;;  %v560_v36 = vadd.f32 0.5, %v432_v28  ;;  %v497_v37 = vmin.f32 %v369_v29, 4.0 }
  0x6a   :  { %v686_v38 = vfloor.f32 %v558_v30  ;;  %v750_v39 = vfloor.f32 %v622_v31  ;;  %v624_v40 = vadd.f32 0.5, %v496_v32  ;;  %v561_v41 = vadd.f32 0.5, %v433_v33 }
  0x6b   :  { %v687_v42 = vfloor.f32 %v559_v34  ;;  %v751_v43 = vfloor.f32 %v623_v35  ;;  %v688_v44 = vfloor.f32 %v560_v36  ;;  %v625_v45 = vadd.f32 0.5, %v497_v37 }
  0x6c   :  { %v814_v48 = vmul.f32 0.25, %v686_v38  ;;  %v878_v49 = vmul.f32 0.25, %v750_v39  ;;  %v752_v50 = vfloor.f32 %v624_v40  ;;  %v689_v51 = vfloor.f32 %v561_v41  ;;  %v54_v38 = vld [vmem:[%s3781_s0 + $0x140] sm:$0xff] }
  0x6d   :  { %v815_v55 = vmul.f32 0.25, %v687_v42  ;;  %v879_v56 = vmul.f32 0.25, %v751_v43  ;;  %v816_v57 = vmul.f32 0.25, %v688_v44  ;;  %v753_v58 = vfloor.f32 %v625_v45  ;;  %v118_v39 = vld [vmem:[%s3781_s0 + $0x340] sm:$0xff]  ;;  %v55_v44 = vld [vmem:[%s3781_s0 + $0x148] sm:$0xff] }
  0x6e   :  { %2454 = vmatprep.mubr.msk.f32.mxu0 %vm918_vm1, %v814_v48  ;;  %2550 = vmatprep.mubr.msk.f32.mxu1 %vm918_vm1, %v878_v49  ;;  %v880_v61 = vmul.f32 0.25, %v752_v50  ;;  %v817_v62 = vmul.f32 0.25, %v689_v51  ;;  %v178_v63 = vmul.f32 4.0, %v50_v46  ;;  %v242_v0 = vmul.f32 4.0, %v114_v47  ;;  %v119_v45 = vld [vmem:[%s3781_s0 + $0x348] sm:$0xff]  ;;  %v56_v46 = vld [vmem:[%s3781_s0 + $0x150] sm:$0xff] }
  0x6f   :  { %2455 = vmatmul.mubr.msk.f32.gmra.mrb[32].mxu0 %vm918_vm1, %v815_v55  ;;  %2551 = vmatmul.mubr.msk.f32.gmra.mrb[32].mxu1 %vm918_vm1, %v879_v56  ;;  %v881_v2 = vmul.f32 0.25, %v753_v58  ;;  %v179_v3 = vmul.f32 4.0, %v51_v52  ;;  %v243_v4 = vmul.f32 4.0, %v115_v53  ;;  %v180_v5 = vmul.f32 4.0, %v52_v54  ;;  %v120_v51 = vld [vmem:[%s3781_s0 + $0x350] sm:$0xff]  ;;  %v57_v52 = vld [vmem:[%s3781_s0 + $0x158] sm:$0xff] }
  0x70   :  { %2457 = vmatprep.mubr.msk.f32.mxu0 %vm918_vm1, %v816_v57  ;;  %2553 = vmatprep.mubr.msk.f32.mxu1 %vm918_vm1, %v880_v61  ;;  %v306_v6 = vmax.f32 %v178_v63, 0.0  ;;  %v370_v7 = vmax.f32 %v242_v0, 0.0  ;;  %v244_v8 = vmul.f32 4.0, %v116_v59  ;;  %v181_v9 = vmul.f32 4.0, %v53_v60  ;;  %v121_v57 = vld [vmem:[%s3781_s0 + $0x358] sm:$0xff] }
  0x71   :  { %v307_v10 = vmax.f32 %v179_v3, 0.0  ;;  %v371_v11 = vmax.f32 %v243_v4, 0.0  ;;  %v308_v12 = vmax.f32 %v180_v5, 0.0  ;;  %v245_v13 = vmul.f32 4.0, %v117_v1 }
  0x72   :  { %v434_v14 = vmin.f32 %v306_v6, 4.0  ;;  %v498_v15 = vmin.f32 %v370_v7, 4.0  ;;  %v372_v16 = vmax.f32 %v244_v8, 0.0  ;;  %v309_v17 = vmax.f32 %v181_v9, 0.0 }
  0x73   :  { %2458 = vmatmul.mubr.msk.f32.gmra.mrb[34].mxu0 %vm918_vm1, %v817_v62  ;;  %2554 = vmatmul.mubr.msk.f32.gmra.mrb[34].mxu1 %vm918_vm1, %v881_v2  ;;  %v435_v18 = vmin.f32 %v307_v10, 4.0  ;;  %v499_v19 = vmin.f32 %v371_v11, 4.0  ;;  %v436_v20 = vmin.f32 %v308_v12, 4.0  ;;  %v373_v21 = vmax.f32 %v245_v13, 0.0 }
  0x74   :  { %v562_v22 = vadd.f32 0.5, %v434_v14  ;;  %v626_v23 = vadd.f32 0.5, %v498_v15  ;;  %v500_v24 = vmin.f32 %v372_v16, 4.0  ;;  %v437_v25 = vmin.f32 %v309_v17, 4.0 }
  0x75   :  { %v563_v26 = vadd.f32 0.5, %v435_v18  ;;  %v627_v27 = vadd.f32 0.5, %v499_v19  ;;  %v564_v28 = vadd.f32 0.5, %v436_v20  ;;  %v501_v29 = vmin.f32 %v373_v21, 4.0 }
  0x76   :  { %v690_v30 = vfloor.f32 %v562_v22  ;;  %v754_v31 = vfloor.f32 %v626_v23  ;;  %v628_v32 = vadd.f32 0.5, %v500_v24  ;;  %v565_v33 = vadd.f32 0.5, %v437_v25 }
  0x77   :  { %v691_v34 = vfloor.f32 %v563_v26  ;;  %v755_v35 = vfloor.f32 %v627_v27  ;;  %v692_v36 = vfloor.f32 %v564_v28  ;;  %v629_v37 = vadd.f32 0.5, %v501_v29 }
  0x78   :  { %v818_v40 = vmul.f32 0.25, %v690_v30  ;;  %v882_v41 = vmul.f32 0.25, %v754_v31  ;;  %v756_v42 = vfloor.f32 %v628_v32  ;;  %v693_v43 = vfloor.f32 %v565_v33  ;;  %v58_v30 = vld [vmem:[%s3781_s0 + $0x160] sm:$0xff] }
  0x79   :  { %v819_v47 = vmul.f32 0.25, %v691_v34  ;;  %v883_v48 = vmul.f32 0.25, %v755_v35  ;;  %v820_v49 = vmul.f32 0.25, %v692_v36  ;;  %v757_v50 = vfloor.f32 %v629_v37  ;;  %v122_v31 = vld [vmem:[%s3781_s0 + $0x360] sm:$0xff]  ;;  %v59_v36 = vld [vmem:[%s3781_s0 + $0x168] sm:$0xff] }
  0x7a   :  { %2460 = vmatprep.mubr.msk.f32.mxu0 %vm918_vm1, %v818_v40  ;;  %2556 = vmatprep.mubr.msk.f32.mxu1 %vm918_vm1, %v882_v41  ;;  %v884_v53 = vmul.f32 0.25, %v756_v42  ;;  %v821_v54 = vmul.f32 0.25, %v693_v43  ;;  %v182_v55 = vmul.f32 4.0, %v54_v38  ;;  %v246_v56 = vmul.f32 4.0, %v118_v39  ;;  %v123_v37 = vld [vmem:[%s3781_s0 + $0x368] sm:$0xff]  ;;  %v60_v38 = vld [vmem:[%s3781_s0 + $0x170] sm:$0xff] }
  0x7b   :  { %2461 = vmatmul.mubr.msk.f32.gmra.mrb[36].mxu0 %vm918_vm1, %v819_v47  ;;  %2557 = vmatmul.mubr.msk.f32.gmra.mrb[36].mxu1 %vm918_vm1, %v883_v48  ;;  %v885_v58 = vmul.f32 0.25, %v757_v50  ;;  %v183_v59 = vmul.f32 4.0, %v55_v44  ;;  %v247_v60 = vmul.f32 4.0, %v119_v45  ;;  %v184_v61 = vmul.f32 4.0, %v56_v46  ;;  %v124_v43 = vld [vmem:[%s3781_s0 + $0x370] sm:$0xff]  ;;  %v61_v44 = vld [vmem:[%s3781_s0 + $0x178] sm:$0xff] }
  0x7c   :  { %2463 = vmatprep.mubr.msk.f32.mxu0 %vm918_vm1, %v820_v49  ;;  %2559 = vmatprep.mubr.msk.f32.mxu1 %vm918_vm1, %v884_v53  ;;  %v310_v62 = vmax.f32 %v182_v55, 0.0  ;;  %v374_v63 = vmax.f32 %v246_v56, 0.0  ;;  %v248_v0 = vmul.f32 4.0, %v120_v51  ;;  %v185_v1 = vmul.f32 4.0, %v57_v52  ;;  %v125_v49 = vld [vmem:[%s3781_s0 + $0x378] sm:$0xff] }
  0x7d   :  { %v311_v2 = vmax.f32 %v183_v59, 0.0  ;;  %v375_v3 = vmax.f32 %v247_v60, 0.0  ;;  %v312_v4 = vmax.f32 %v184_v61, 0.0  ;;  %v249_v5 = vmul.f32 4.0, %v121_v57 }
  0x7e   :  { %v438_v6 = vmin.f32 %v310_v62, 4.0  ;;  %v502_v7 = vmin.f32 %v374_v63, 4.0  ;;  %v376_v8 = vmax.f32 %v248_v0, 0.0  ;;  %v313_v9 = vmax.f32 %v185_v1, 0.0 }
  0x7f   :  { %2464 = vmatmul.mubr.msk.f32.gmra.mrb[38].mxu0 %vm918_vm1, %v821_v54  ;;  %2560 = vmatmul.mubr.msk.f32.gmra.mrb[38].mxu1 %vm918_vm1, %v885_v58  ;;  %v439_v10 = vmin.f32 %v311_v2, 4.0  ;;  %v503_v11 = vmin.f32 %v375_v3, 4.0  ;;  %v440_v12 = vmin.f32 %v312_v4, 4.0  ;;  %v377_v13 = vmax.f32 %v249_v5, 0.0 }
  0x80   :  { %v566_v14 = vadd.f32 0.5, %v438_v6  ;;  %v630_v15 = vadd.f32 0.5, %v502_v7  ;;  %v504_v16 = vmin.f32 %v376_v8, 4.0  ;;  %v441_v17 = vmin.f32 %v313_v9, 4.0 }
  0x81   :  { %v567_v18 = vadd.f32 0.5, %v439_v10  ;;  %v631_v19 = vadd.f32 0.5, %v503_v11  ;;  %v568_v20 = vadd.f32 0.5, %v440_v12  ;;  %v505_v21 = vmin.f32 %v377_v13, 4.0 }
  0x82   :  { %v694_v22 = vfloor.f32 %v566_v14  ;;  %v758_v23 = vfloor.f32 %v630_v15  ;;  %v632_v24 = vadd.f32 0.5, %v504_v16  ;;  %v569_v25 = vadd.f32 0.5, %v441_v17 }
  0x83   :  { %v695_v26 = vfloor.f32 %v567_v18  ;;  %v759_v27 = vfloor.f32 %v631_v19  ;;  %v696_v28 = vfloor.f32 %v568_v20  ;;  %v633_v29 = vadd.f32 0.5, %v505_v21 }
  0x84   :  { %v822_v32 = vmul.f32 0.25, %v694_v22  ;;  %v886_v33 = vmul.f32 0.25, %v758_v23  ;;  %v760_v34 = vfloor.f32 %v632_v24  ;;  %v697_v35 = vfloor.f32 %v569_v25  ;;  %v62_v22 = vld [vmem:[%s3781_s0 + $0x180] sm:$0xff] }
  0x85   :  { %v823_v39 = vmul.f32 0.25, %v695_v26  ;;  %v887_v40 = vmul.f32 0.25, %v759_v27  ;;  %v824_v41 = vmul.f32 0.25, %v696_v28  ;;  %v761_v42 = vfloor.f32 %v633_v29  ;;  %v126_v23 = vld [vmem:[%s3781_s0 + $0x380] sm:$0xff]  ;;  %v63_v28 = vld [vmem:[%s3781_s0 + $0x188] sm:$0xff] }
  0x86   :  { %2466 = vmatprep.mubr.msk.f32.mxu0 %vm918_vm1, %v822_v32  ;;  %2562 = vmatprep.mubr.msk.f32.mxu1 %vm918_vm1, %v886_v33  ;;  %v888_v45 = vmul.f32 0.25, %v760_v34  ;;  %v825_v46 = vmul.f32 0.25, %v697_v35  ;;  %v186_v47 = vmul.f32 4.0, %v58_v30  ;;  %v250_v48 = vmul.f32 4.0, %v122_v31  ;;  %v127_v29 = vld [vmem:[%s3781_s0 + $0x388] sm:$0xff]  ;;  %v64_v30 = vld [vmem:[%s3781_s0 + $0x190] sm:$0xff] }
  0x87   :  { %2467 = vmatmul.mubr.msk.f32.gmra.mrb[40].mxu0 %vm918_vm1, %v823_v39  ;;  %2563 = vmatmul.mubr.msk.f32.gmra.mrb[40].mxu1 %vm918_vm1, %v887_v40  ;;  %v889_v50 = vmul.f32 0.25, %v761_v42  ;;  %v187_v51 = vmul.f32 4.0, %v59_v36  ;;  %v251_v52 = vmul.f32 4.0, %v123_v37  ;;  %v188_v53 = vmul.f32 4.0, %v60_v38  ;;  %v128_v35 = vld [vmem:[%s3781_s0 + $0x390] sm:$0xff]  ;;  %v65_v36 = vld [vmem:[%s3781_s0 + $0x198] sm:$0xff] }
  0x88   :  { %2469 = vmatprep.mubr.msk.f32.mxu0 %vm918_vm1, %v824_v41  ;;  %2565 = vmatprep.mubr.msk.f32.mxu1 %vm918_vm1, %v888_v45  ;;  %v314_v54 = vmax.f32 %v186_v47, 0.0  ;;  %v378_v55 = vmax.f32 %v250_v48, 0.0  ;;  %v252_v56 = vmul.f32 4.0, %v124_v43  ;;  %v189_v57 = vmul.f32 4.0, %v61_v44  ;;  %v129_v41 = vld [vmem:[%s3781_s0 + $0x398] sm:$0xff] }
  0x89   :  { %v315_v58 = vmax.f32 %v187_v51, 0.0  ;;  %v379_v59 = vmax.f32 %v251_v52, 0.0  ;;  %v316_v60 = vmax.f32 %v188_v53, 0.0  ;;  %v253_v61 = vmul.f32 4.0, %v125_v49 }
  0x8a   :  { %v442_v62 = vmin.f32 %v314_v54, 4.0  ;;  %v506_v63 = vmin.f32 %v378_v55, 4.0  ;;  %v380_v0 = vmax.f32 %v252_v56, 0.0  ;;  %v317_v1 = vmax.f32 %v189_v57, 0.0 }
  0x8b   :  { %2470 = vmatmul.mubr.msk.f32.gmra.mrb[42].mxu0 %vm918_vm1, %v825_v46  ;;  %2566 = vmatmul.mubr.msk.f32.gmra.mrb[42].mxu1 %vm918_vm1, %v889_v50  ;;  %v443_v2 = vmin.f32 %v315_v58, 4.0  ;;  %v507_v3 = vmin.f32 %v379_v59, 4.0  ;;  %v444_v4 = vmin.f32 %v316_v60, 4.0  ;;  %v381_v5 = vmax.f32 %v253_v61, 0.0 }
  0x8c   :  { %v570_v6 = vadd.f32 0.5, %v442_v62  ;;  %v634_v7 = vadd.f32 0.5, %v506_v63  ;;  %v508_v8 = vmin.f32 %v380_v0, 4.0  ;;  %v445_v9 = vmin.f32 %v317_v1, 4.0 }
  0x8d   :  { %v571_v10 = vadd.f32 0.5, %v443_v2  ;;  %v635_v11 = vadd.f32 0.5, %v507_v3  ;;  %v572_v12 = vadd.f32 0.5, %v444_v4  ;;  %v509_v13 = vmin.f32 %v381_v5, 4.0 }
  0x8e   :  { %v698_v14 = vfloor.f32 %v570_v6  ;;  %v762_v15 = vfloor.f32 %v634_v7  ;;  %v636_v16 = vadd.f32 0.5, %v508_v8  ;;  %v573_v17 = vadd.f32 0.5, %v445_v9 }
  0x8f   :  { %v699_v18 = vfloor.f32 %v571_v10  ;;  %v763_v19 = vfloor.f32 %v635_v11  ;;  %v700_v20 = vfloor.f32 %v572_v12  ;;  %v637_v21 = vadd.f32 0.5, %v509_v13 }
  0x90   :  { %v826_v24 = vmul.f32 0.25, %v698_v14  ;;  %v890_v25 = vmul.f32 0.25, %v762_v15  ;;  %v764_v26 = vfloor.f32 %v636_v16  ;;  %v701_v27 = vfloor.f32 %v573_v17  ;;  %v66_v14 = vld [vmem:[%s3781_s0 + $0x1a0] sm:$0xff] }
  0x91   :  { %v827_v31 = vmul.f32 0.25, %v699_v18  ;;  %v891_v32 = vmul.f32 0.25, %v763_v19  ;;  %v828_v33 = vmul.f32 0.25, %v700_v20  ;;  %v765_v34 = vfloor.f32 %v637_v21  ;;  %v130_v15 = vld [vmem:[%s3781_s0 + $0x3a0] sm:$0xff]  ;;  %v67_v20 = vld [vmem:[%s3781_s0 + $0x1a8] sm:$0xff] }
  0x92   :  { %2472 = vmatprep.mubr.msk.f32.mxu0 %vm918_vm1, %v826_v24  ;;  %2568 = vmatprep.mubr.msk.f32.mxu1 %vm918_vm1, %v890_v25  ;;  %v892_v37 = vmul.f32 0.25, %v764_v26  ;;  %v829_v38 = vmul.f32 0.25, %v701_v27  ;;  %v190_v39 = vmul.f32 4.0, %v62_v22  ;;  %v254_v40 = vmul.f32 4.0, %v126_v23  ;;  %v131_v21 = vld [vmem:[%s3781_s0 + $0x3a8] sm:$0xff]  ;;  %v68_v22 = vld [vmem:[%s3781_s0 + $0x1b0] sm:$0xff] }
  0x93   :  { %2473 = vmatmul.mubr.msk.f32.gmra.mrb[44].mxu0 %vm918_vm1, %v827_v31  ;;  %2569 = vmatmul.mubr.msk.f32.gmra.mrb[44].mxu1 %vm918_vm1, %v891_v32  ;;  %v893_v42 = vmul.f32 0.25, %v765_v34  ;;  %v191_v43 = vmul.f32 4.0, %v63_v28  ;;  %v255_v44 = vmul.f32 4.0, %v127_v29  ;;  %v192_v45 = vmul.f32 4.0, %v64_v30  ;;  %v132_v27 = vld [vmem:[%s3781_s0 + $0x3b0] sm:$0xff]  ;;  %v69_v28 = vld [vmem:[%s3781_s0 + $0x1b8] sm:$0xff] }
  0x94   :  { %2475 = vmatprep.mubr.msk.f32.mxu0 %vm918_vm1, %v828_v33  ;;  %2571 = vmatprep.mubr.msk.f32.mxu1 %vm918_vm1, %v892_v37  ;;  %v318_v46 = vmax.f32 %v190_v39, 0.0  ;;  %v382_v47 = vmax.f32 %v254_v40, 0.0  ;;  %v256_v48 = vmul.f32 4.0, %v128_v35  ;;  %v193_v49 = vmul.f32 4.0, %v65_v36  ;;  %v133_v33 = vld [vmem:[%s3781_s0 + $0x3b8] sm:$0xff] }
  0x95   :  { %v319_v50 = vmax.f32 %v191_v43, 0.0  ;;  %v383_v51 = vmax.f32 %v255_v44, 0.0  ;;  %v320_v52 = vmax.f32 %v192_v45, 0.0  ;;  %v257_v53 = vmul.f32 4.0, %v129_v41 }
  0x96   :  { %v446_v54 = vmin.f32 %v318_v46, 4.0  ;;  %v510_v55 = vmin.f32 %v382_v47, 4.0  ;;  %v384_v56 = vmax.f32 %v256_v48, 0.0  ;;  %v321_v57 = vmax.f32 %v193_v49, 0.0 }
  0x97   :  { %2476 = vmatmul.mubr.msk.f32.gmra.mrb[46].mxu0 %vm918_vm1, %v829_v38  ;;  %2572 = vmatmul.mubr.msk.f32.gmra.mrb[46].mxu1 %vm918_vm1, %v893_v42  ;;  %v447_v58 = vmin.f32 %v319_v50, 4.0  ;;  %v511_v59 = vmin.f32 %v383_v51, 4.0  ;;  %v448_v60 = vmin.f32 %v320_v52, 4.0  ;;  %v385_v61 = vmax.f32 %v257_v53, 0.0 }
  0x98   :  { %v574_v62 = vadd.f32 0.5, %v446_v54  ;;  %v638_v63 = vadd.f32 0.5, %v510_v55  ;;  %v512_v0 = vmin.f32 %v384_v56, 4.0  ;;  %v449_v1 = vmin.f32 %v321_v57, 4.0 }
  0x99   :  { %v575_v2 = vadd.f32 0.5, %v447_v58  ;;  %v639_v3 = vadd.f32 0.5, %v511_v59  ;;  %v576_v4 = vadd.f32 0.5, %v448_v60  ;;  %v513_v5 = vmin.f32 %v385_v61, 4.0 }
  0x9a   :  { %v702_v6 = vfloor.f32 %v574_v62  ;;  %v766_v7 = vfloor.f32 %v638_v63  ;;  %v640_v8 = vadd.f32 0.5, %v512_v0  ;;  %v577_v9 = vadd.f32 0.5, %v449_v1 }
  0x9b   :  { %v703_v10 = vfloor.f32 %v575_v2  ;;  %v767_v11 = vfloor.f32 %v639_v3  ;;  %v704_v12 = vfloor.f32 %v576_v4  ;;  %v641_v13 = vadd.f32 0.5, %v513_v5 }
  0x9c   :  { %v830_v16 = vmul.f32 0.25, %v702_v6  ;;  %v894_v17 = vmul.f32 0.25, %v766_v7  ;;  %v768_v18 = vfloor.f32 %v640_v8  ;;  %v705_v19 = vfloor.f32 %v577_v9  ;;  %v70_v6 = vld [vmem:[%s3781_s0 + $0x1c0] sm:$0xff] }
  0x9d   :  { %v831_v23 = vmul.f32 0.25, %v703_v10  ;;  %v895_v24 = vmul.f32 0.25, %v767_v11  ;;  %v832_v25 = vmul.f32 0.25, %v704_v12  ;;  %v769_v26 = vfloor.f32 %v641_v13  ;;  %v134_v7 = vld [vmem:[%s3781_s0 + $0x3c0] sm:$0xff]  ;;  %v71_v12 = vld [vmem:[%s3781_s0 + $0x1c8] sm:$0xff] }
  0x9e   :  { %2478 = vmatprep.mubr.msk.f32.mxu0 %vm918_vm1, %v830_v16  ;;  %2574 = vmatprep.mubr.msk.f32.mxu1 %vm918_vm1, %v894_v17  ;;  %v896_v29 = vmul.f32 0.25, %v768_v18  ;;  %v833_v30 = vmul.f32 0.25, %v705_v19  ;;  %v194_v31 = vmul.f32 4.0, %v66_v14  ;;  %v258_v32 = vmul.f32 4.0, %v130_v15  ;;  %v135_v13 = vld [vmem:[%s3781_s0 + $0x3c8] sm:$0xff]  ;;  %v72_v14 = vld [vmem:[%s3781_s0 + $0x1d0] sm:$0xff] }
  0x9f   :  { %2479 = vmatmul.mubr.msk.f32.gmra.mrb[48].mxu0 %vm918_vm1, %v831_v23  ;;  %2575 = vmatmul.mubr.msk.f32.gmra.mrb[48].mxu1 %vm918_vm1, %v895_v24  ;;  %v897_v34 = vmul.f32 0.25, %v769_v26  ;;  %v195_v35 = vmul.f32 4.0, %v67_v20  ;;  %v259_v36 = vmul.f32 4.0, %v131_v21  ;;  %v196_v37 = vmul.f32 4.0, %v68_v22  ;;  %v136_v19 = vld [vmem:[%s3781_s0 + $0x3d0] sm:$0xff]  ;;  %v73_v20 = vld [vmem:[%s3781_s0 + $0x1d8] sm:$0xff] }
  0xa0   :  { %2481 = vmatprep.mubr.msk.f32.mxu0 %vm918_vm1, %v832_v25  ;;  %2577 = vmatprep.mubr.msk.f32.mxu1 %vm918_vm1, %v896_v29  ;;  %v322_v38 = vmax.f32 %v194_v31, 0.0  ;;  %v386_v39 = vmax.f32 %v258_v32, 0.0  ;;  %v260_v40 = vmul.f32 4.0, %v132_v27  ;;  %v197_v41 = vmul.f32 4.0, %v69_v28  ;;  %v137_v25 = vld [vmem:[%s3781_s0 + $0x3d8] sm:$0xff] }
  0xa1   :  { %v323_v42 = vmax.f32 %v195_v35, 0.0  ;;  %v387_v43 = vmax.f32 %v259_v36, 0.0  ;;  %v324_v44 = vmax.f32 %v196_v37, 0.0  ;;  %v261_v45 = vmul.f32 4.0, %v133_v33 }
  0xa2   :  { %v450_v46 = vmin.f32 %v322_v38, 4.0  ;;  %v514_v47 = vmin.f32 %v386_v39, 4.0  ;;  %v388_v48 = vmax.f32 %v260_v40, 0.0  ;;  %v325_v49 = vmax.f32 %v197_v41, 0.0 }
  0xa3   :  { %2482 = vmatmul.mubr.msk.f32.gmra.mrb[50].mxu0 %vm918_vm1, %v833_v30  ;;  %2578 = vmatmul.mubr.msk.f32.gmra.mrb[50].mxu1 %vm918_vm1, %v897_v34  ;;  %v451_v50 = vmin.f32 %v323_v42, 4.0  ;;  %v515_v51 = vmin.f32 %v387_v43, 4.0  ;;  %v452_v52 = vmin.f32 %v324_v44, 4.0  ;;  %v389_v53 = vmax.f32 %v261_v45, 0.0 }
  0xa4   :  { %v578_v54 = vadd.f32 0.5, %v450_v46  ;;  %v642_v55 = vadd.f32 0.5, %v514_v47  ;;  %v516_v56 = vmin.f32 %v388_v48, 4.0  ;;  %v453_v57 = vmin.f32 %v325_v49, 4.0 }
  0xa5   :  { %v579_v58 = vadd.f32 0.5, %v451_v50  ;;  %v643_v59 = vadd.f32 0.5, %v515_v51  ;;  %v580_v60 = vadd.f32 0.5, %v452_v52  ;;  %v517_v61 = vmin.f32 %v389_v53, 4.0 }
  0xa6   :  { %v706_v62 = vfloor.f32 %v578_v54  ;;  %v770_v63 = vfloor.f32 %v642_v55  ;;  %v644_v0 = vadd.f32 0.5, %v516_v56  ;;  %v581_v1 = vadd.f32 0.5, %v453_v57 }
  0xa7   :  { %v707_v2 = vfloor.f32 %v579_v58  ;;  %v771_v3 = vfloor.f32 %v643_v59  ;;  %v708_v4 = vfloor.f32 %v580_v60  ;;  %v645_v5 = vadd.f32 0.5, %v517_v61 }
  0xa8   :  { %v834_v8 = vmul.f32 0.25, %v706_v62  ;;  %v898_v9 = vmul.f32 0.25, %v770_v63  ;;  %v772_v10 = vfloor.f32 %v644_v0  ;;  %v709_v11 = vfloor.f32 %v581_v1  ;;  %v74_v62 = vld [vmem:[%s3781_s0 + $0x1e0] sm:$0xff] }
  0xa9   :  { %v835_v15 = vmul.f32 0.25, %v707_v2  ;;  %v899_v16 = vmul.f32 0.25, %v771_v3  ;;  %v836_v17 = vmul.f32 0.25, %v708_v4  ;;  %v773_v18 = vfloor.f32 %v645_v5  ;;  %v138_v63 = vld [vmem:[%s3781_s0 + $0x3e0] sm:$0xff]  ;;  %v75_v4 = vld [vmem:[%s3781_s0 + $0x1e8] sm:$0xff] }
  0xaa   :  { %2484 = vmatprep.mubr.msk.f32.mxu0 %vm918_vm1, %v834_v8  ;;  %2580 = vmatprep.mubr.msk.f32.mxu1 %vm918_vm1, %v898_v9  ;;  %v900_v21 = vmul.f32 0.25, %v772_v10  ;;  %v837_v22 = vmul.f32 0.25, %v709_v11  ;;  %v198_v23 = vmul.f32 4.0, %v70_v6  ;;  %v262_v24 = vmul.f32 4.0, %v134_v7  ;;  %v139_v5 = vld [vmem:[%s3781_s0 + $0x3e8] sm:$0xff]  ;;  %v76_v6 = vld [vmem:[%s3781_s0 + $0x1f0] sm:$0xff] }
  0xab   :  { %2485 = vmatmul.mubr.msk.f32.gmra.mrb[52].mxu0 %vm918_vm1, %v835_v15  ;;  %2581 = vmatmul.mubr.msk.f32.gmra.mrb[52].mxu1 %vm918_vm1, %v899_v16  ;;  %v901_v26 = vmul.f32 0.25, %v773_v18  ;;  %v199_v27 = vmul.f32 4.0, %v71_v12  ;;  %v263_v28 = vmul.f32 4.0, %v135_v13  ;;  %v200_v29 = vmul.f32 4.0, %v72_v14  ;;  %v140_v11 = vld [vmem:[%s3781_s0 + $0x3f0] sm:$0xff]  ;;  %v77_v12 = vld [vmem:[%s3781_s0 + $0x1f8] sm:$0xff] }
  0xac   :  { %2487 = vmatprep.mubr.msk.f32.mxu0 %vm918_vm1, %v836_v17  ;;  %2583 = vmatprep.mubr.msk.f32.mxu1 %vm918_vm1, %v900_v21  ;;  %v326_v30 = vmax.f32 %v198_v23, 0.0  ;;  %v390_v31 = vmax.f32 %v262_v24, 0.0  ;;  %v264_v32 = vmul.f32 4.0, %v136_v19  ;;  %v201_v33 = vmul.f32 4.0, %v73_v20  ;;  %v141_v17 = vld [vmem:[%s3781_s0 + $0x3f8] sm:$0xff] }
  0xad   :  { %v327_v34 = vmax.f32 %v199_v27, 0.0  ;;  %v391_v35 = vmax.f32 %v263_v28, 0.0  ;;  %v328_v36 = vmax.f32 %v200_v29, 0.0  ;;  %v265_v37 = vmul.f32 4.0, %v137_v25 }
  0xae   :  { %v454_v38 = vmin.f32 %v326_v30, 4.0  ;;  %v518_v39 = vmin.f32 %v390_v31, 4.0  ;;  %v392_v40 = vmax.f32 %v264_v32, 0.0  ;;  %v329_v41 = vmax.f32 %v201_v33, 0.0 }
  0xaf   :  { %2488 = vmatmul.mubr.msk.f32.gmra.mrb[54].mxu0 %vm918_vm1, %v837_v22  ;;  %2584 = vmatmul.mubr.msk.f32.gmra.mrb[54].mxu1 %vm918_vm1, %v901_v26  ;;  %v455_v42 = vmin.f32 %v327_v34, 4.0  ;;  %v519_v43 = vmin.f32 %v391_v35, 4.0  ;;  %v456_v44 = vmin.f32 %v328_v36, 4.0  ;;  %v393_v45 = vmax.f32 %v265_v37, 0.0 }
  0xb0   :  { %v582_v46 = vadd.f32 0.5, %v454_v38  ;;  %v646_v47 = vadd.f32 0.5, %v518_v39  ;;  %v520_v48 = vmin.f32 %v392_v40, 4.0  ;;  %v457_v49 = vmin.f32 %v329_v41, 4.0 }
  0xb1   :  { %v583_v50 = vadd.f32 0.5, %v455_v42  ;;  %v647_v51 = vadd.f32 0.5, %v519_v43  ;;  %v584_v52 = vadd.f32 0.5, %v456_v44  ;;  %v521_v53 = vmin.f32 %v393_v45, 4.0 }
  0xb2   :  { %v710_v54 = vfloor.f32 %v582_v46  ;;  %v774_v55 = vfloor.f32 %v646_v47  ;;  %v648_v56 = vadd.f32 0.5, %v520_v48  ;;  %v585_v57 = vadd.f32 0.5, %v457_v49 }
  0xb3   :  { %v711_v58 = vfloor.f32 %v583_v50  ;;  %v775_v59 = vfloor.f32 %v647_v51  ;;  %v712_v60 = vfloor.f32 %v584_v52  ;;  %v649_v61 = vadd.f32 0.5, %v521_v53 }
  0xb4   :  { %v838_v0 = vmul.f32 0.25, %v710_v54  ;;  %v902_v1 = vmul.f32 0.25, %v774_v55  ;;  %v776_v2 = vfloor.f32 %v648_v56  ;;  %v713_v3 = vfloor.f32 %v585_v57 }
  0xb5   :  { %v839_v7 = vmul.f32 0.25, %v711_v58  ;;  %v903_v8 = vmul.f32 0.25, %v775_v59  ;;  %v840_v9 = vmul.f32 0.25, %v712_v60  ;;  %v777_v10 = vfloor.f32 %v649_v61 }
  0xb6   :  { %2490 = vmatprep.mubr.msk.f32.mxu0 %vm918_vm1, %v838_v0  ;;  %2586 = vmatprep.mubr.msk.f32.mxu1 %vm918_vm1, %v902_v1  ;;  %v904_v13 = vmul.f32 0.25, %v776_v2  ;;  %v841_v14 = vmul.f32 0.25, %v713_v3  ;;  %v202_v15 = vmul.f32 4.0, %v74_v62  ;;  %v266_v16 = vmul.f32 4.0, %v138_v63  ;;  %v3138_v1 = vld [vmem:[%s3782_s2] ss:$0 sm:$0xff] }
  0xb7   :  { %2491 = vmatmul.mubr.msk.f32.gmra.mrb[56].mxu0 %vm918_vm1, %v839_v7  ;;  %2587 = vmatmul.mubr.msk.f32.gmra.mrb[56].mxu1 %vm918_vm1, %v903_v8  ;;  %v905_v18 = vmul.f32 0.25, %v777_v10  ;;  %v203_v19 = vmul.f32 4.0, %v75_v4  ;;  %v267_v20 = vmul.f32 4.0, %v139_v5  ;;  %v204_v21 = vmul.f32 4.0, %v76_v6 }
  0xb8   :  { %2493 = vmatprep.mubr.msk.f32.mxu0 %vm918_vm1, %v840_v9  ;;  %2589 = vmatprep.mubr.msk.f32.mxu1 %vm918_vm1, %v904_v13  ;;  %v330_v22 = vmax.f32 %v202_v15, 0.0  ;;  %v394_v23 = vmax.f32 %v266_v16, 0.0  ;;  %v268_v24 = vmul.f32 4.0, %v140_v11  ;;  %v205_v25 = vmul.f32 4.0, %v77_v12 }
  0xb9   :  { %v331_v26 = vmax.f32 %v203_v19, 0.0  ;;  %v395_v27 = vmax.f32 %v267_v20, 0.0  ;;  %v332_v28 = vmax.f32 %v204_v21, 0.0  ;;  %v269_v29 = vmul.f32 4.0, %v141_v17 }
  0xba   :  { %v458_v30 = vmin.f32 %v330_v22, 4.0  ;;  %v522_v31 = vmin.f32 %v394_v23, 4.0  ;;  %v396_v32 = vmax.f32 %v268_v24, 0.0  ;;  %v333_v33 = vmax.f32 %v205_v25, 0.0 }
  0xbb   :  { %2494 = vmatmul.mubr.msk.f32.gmra.mrb[58].mxu0 %vm918_vm1, %v841_v14  ;;  %2590 = vmatmul.mubr.msk.f32.gmra.mrb[58].mxu1 %vm918_vm1, %v905_v18  ;;  %v459_v34 = vmin.f32 %v331_v26, 4.0  ;;  %v523_v35 = vmin.f32 %v395_v27, 4.0  ;;  %v460_v36 = vmin.f32 %v332_v28, 4.0  ;;  %v397_v37 = vmax.f32 %v269_v29, 0.0 }
  0xbc   :  { %v586_v38 = vadd.f32 0.5, %v458_v30  ;;  %v650_v39 = vadd.f32 0.5, %v522_v31  ;;  %v524_v40 = vmin.f32 %v396_v32, 4.0  ;;  %v461_v41 = vmin.f32 %v333_v33, 4.0 }
  0xbd   :  { %v587_v42 = vadd.f32 0.5, %v459_v34  ;;  %v651_v43 = vadd.f32 0.5, %v523_v35  ;;  %v588_v44 = vadd.f32 0.5, %v460_v36  ;;  %v525_v45 = vmin.f32 %v397_v37, 4.0 }
  0xbe   :  { %v714_v46 = vfloor.f32 %v586_v38  ;;  %v778_v47 = vfloor.f32 %v650_v39  ;;  %v652_v48 = vadd.f32 0.5, %v524_v40  ;;  %v589_v49 = vadd.f32 0.5, %v461_v41 }
  0xbf   :  { %v715_v50 = vfloor.f32 %v587_v42  ;;  %v779_v51 = vfloor.f32 %v651_v43  ;;  %v716_v52 = vfloor.f32 %v588_v44  ;;  %v653_v53 = vadd.f32 0.5, %v525_v45 }
  0xc0   :  { %v842_v54 = vmul.f32 0.25, %v714_v46  ;;  %v906_v55 = vmul.f32 0.25, %v778_v47  ;;  %v780_v56 = vfloor.f32 %v652_v48  ;;  %v717_v57 = vfloor.f32 %v589_v49 }
  0xc1   :  { %v843_v58 = vmul.f32 0.25, %v715_v50  ;;  %v907_v59 = vmul.f32 0.25, %v779_v51  ;;  %v844_v60 = vmul.f32 0.25, %v716_v52  ;;  %v781_v61 = vfloor.f32 %v653_v53 }
  0xc2   :  { %2496 = vmatprep.mubr.msk.f32.mxu0 %vm918_vm1, %v842_v54  ;;  %2592 = vmatprep.mubr.msk.f32.mxu1 %vm918_vm1, %v906_v55  ;;  %v908_v62 = vmul.f32 0.25, %v780_v56  ;;  %v845_v63 = vmul.f32 0.25, %v717_v57 }
  0xc3   :  { %2497 = vmatmul.mubr.msk.f32.gmra.mrb[60].mxu0 %vm918_vm1, %v843_v58  ;;  %2593 = vmatmul.mubr.msk.f32.gmra.mrb[60].mxu1 %vm918_vm1, %v907_v59  ;;  %v909_v0 = vmul.f32 0.25, %v781_v61 }
  0xc4   :  { %2499 = vmatprep.mubr.msk.f32.mxu0 %vm918_vm1, %v844_v60  ;;  %2595 = vmatprep.mubr.msk.f32.mxu1 %vm918_vm1, %v908_v62 }
  0xc7   :  { %2500 = vmatmul.mubr.msk.f32.gmra.mrb[62].mxu0 %vm918_vm1, %v845_v63  ;;  %2596 = vmatmul.mubr.msk.f32.gmra.mrb[62].mxu1 %vm918_vm1, %v909_v0 }
  0xe3   :  { %v2408_v2 = vpop.f32.mrb[0].mxu0 }
  0xe4   :  { %v2504_v3 = vpop.f32.mrb[0].mxu1  ;;  %v1379_v4 = vadd.f32 %v2408_v2, %v3138_v1  ;;  %v1373_v6 = vpop.f32.mrb[1].mxu0 }
  0xe5   :  { %v1699_v5 = vadd.f32 %v2504_v3, %v3138_v1  ;;  %v1693_v7 = vpop.f32.mrb[1].mxu1  ;;  %v1374_v8 = vadd.f32 %v3138_v1, %v1373_v6 }
  0xe6   :  { %v1694_v9 = vadd.f32 %v3138_v1, %v1693_v7  ;;  %2014 = vst.msk [vmem:[%s3783_s3 + $0x8] sm:$0xff] %vm2012_vm2, %v1379_v4 }
  0xe7   :  { %2078 = vst.msk [vmem:[%s3783_s3 + $0x208] sm:$0xff] %vm2012_vm2, %v1699_v5  ;;  %2013 = vst.msk [vmem:[%s3783_s3] sm:$0xff] %vm2012_vm2, %v1374_v8  ;;  %v2411_v10 = vpop.f32.mrb[2].mxu0 }
  0xe8   :  { %2077 = vst.msk [vmem:[%s3783_s3 + $0x200] sm:$0xff] %vm2012_vm2, %v1694_v9  ;;  %v2507_v11 = vpop.f32.mrb[2].mxu1  ;;  %v1389_v12 = vadd.f32 %v2411_v10, %v3138_v1  ;;  %v1383_v14 = vpop.f32.mrb[3].mxu0 }
  0xe9   :  { %v1709_v13 = vadd.f32 %v2507_v11, %v3138_v1  ;;  %v1703_v15 = vpop.f32.mrb[3].mxu1  ;;  %v1384_v16 = vadd.f32 %v3138_v1, %v1383_v14 }
  0xea   :  { %v1704_v17 = vadd.f32 %v3138_v1, %v1703_v15  ;;  %2016 = vst.msk [vmem:[%s3783_s3 + $0x18] sm:$0xff] %vm2012_vm2, %v1389_v12 }
  0xeb   :  { %2080 = vst.msk [vmem:[%s3783_s3 + $0x218] sm:$0xff] %vm2012_vm2, %v1709_v13  ;;  %2015 = vst.msk [vmem:[%s3783_s3 + $0x10] sm:$0xff] %vm2012_vm2, %v1384_v16 }
  0xec   :  { %2079 = vst.msk [vmem:[%s3783_s3 + $0x210] sm:$0xff] %vm2012_vm2, %v1704_v17 }
  0xee   :  { %v2414_v18 = vpop.f32.mrb[4].mxu0  ;;  %v2510_v19 = vpop.f32.mrb[4].mxu1 }
  0xef   :  { %v1399_v20 = vadd.f32 %v2414_v18, %v3138_v1  ;;  %v1719_v21 = vadd.f32 %v2510_v19, %v3138_v1  ;;  %v1393_v22 = vpop.f32.mrb[5].mxu0  ;;  %v1713_v23 = vpop.f32.mrb[5].mxu1 }
  0xf0   :  { %v1394_v24 = vadd.f32 %v3138_v1, %v1393_v22  ;;  %v1714_v25 = vadd.f32 %v3138_v1, %v1713_v23 }
  0xf1   :  { %2018 = vst.msk [vmem:[%s3783_s3 + $0x28] sm:$0xff] %vm2012_vm2, %v1399_v20  ;;  %2082 = vst.msk [vmem:[%s3783_s3 + $0x228] sm:$0xff] %vm2012_vm2, %v1719_v21 }
  0xf2   :  { %2017 = vst.msk [vmem:[%s3783_s3 + $0x20] sm:$0xff] %vm2012_vm2, %v1394_v24  ;;  %2081 = vst.msk [vmem:[%s3783_s3 + $0x220] sm:$0xff] %vm2012_vm2, %v1714_v25  ;;  %v2417_v26 = vpop.f32.mrb[6].mxu0  ;;  %v2513_v27 = vpop.f32.mrb[6].mxu1 }
  0xf3   :  { %v1409_v28 = vadd.f32 %v2417_v26, %v3138_v1  ;;  %v1729_v29 = vadd.f32 %v2513_v27, %v3138_v1  ;;  %v1403_v30 = vpop.f32.mrb[7].mxu0  ;;  %v1723_v31 = vpop.f32.mrb[7].mxu1 }
  0xf4   :  { %v1404_v32 = vadd.f32 %v3138_v1, %v1403_v30  ;;  %v1724_v33 = vadd.f32 %v3138_v1, %v1723_v31 }
  0xf5   :  { %2020 = vst.msk [vmem:[%s3783_s3 + $0x38] sm:$0xff] %vm2012_vm2, %v1409_v28  ;;  %2084 = vst.msk [vmem:[%s3783_s3 + $0x238] sm:$0xff] %vm2012_vm2, %v1729_v29 }
  0xf6   :  { %2019 = vst.msk [vmem:[%s3783_s3 + $0x30] sm:$0xff] %vm2012_vm2, %v1404_v32  ;;  %2083 = vst.msk [vmem:[%s3783_s3 + $0x230] sm:$0xff] %vm2012_vm2, %v1724_v33 }
  0xfa   :  { %v2420_v34 = vpop.f32.mrb[8].mxu0  ;;  %v2516_v35 = vpop.f32.mrb[8].mxu1 }
  0xfb   :  { %v1419_v36 = vadd.f32 %v2420_v34, %v3138_v1  ;;  %v1739_v37 = vadd.f32 %v2516_v35, %v3138_v1  ;;  %v1413_v38 = vpop.f32.mrb[9].mxu0  ;;  %v1733_v39 = vpop.f32.mrb[9].mxu1 }
  0xfc   :  { %v1414_v40 = vadd.f32 %v3138_v1, %v1413_v38  ;;  %v1734_v41 = vadd.f32 %v3138_v1, %v1733_v39 }
  0xfd   :  { %2022 = vst.msk [vmem:[%s3783_s3 + $0x48] sm:$0xff] %vm2012_vm2, %v1419_v36  ;;  %2086 = vst.msk [vmem:[%s3783_s3 + $0x248] sm:$0xff] %vm2012_vm2, %v1739_v37 }
  0xfe   :  { %2021 = vst.msk [vmem:[%s3783_s3 + $0x40] sm:$0xff] %vm2012_vm2, %v1414_v40  ;;  %2085 = vst.msk [vmem:[%s3783_s3 + $0x240] sm:$0xff] %vm2012_vm2, %v1734_v41  ;;  %v2423_v42 = vpop.f32.mrb[10].mxu0  ;;  %v2519_v43 = vpop.f32.mrb[10].mxu1 }
  0xff   :  { %v1429_v44 = vadd.f32 %v2423_v42, %v3138_v1  ;;  %v1749_v45 = vadd.f32 %v2519_v43, %v3138_v1  ;;  %v1423_v46 = vpop.f32.mrb[11].mxu0  ;;  %v1743_v47 = vpop.f32.mrb[11].mxu1 }
 0x100   :  { %v1424_v48 = vadd.f32 %v3138_v1, %v1423_v46  ;;  %v1744_v49 = vadd.f32 %v3138_v1, %v1743_v47 }
 0x101   :  { %2024 = vst.msk [vmem:[%s3783_s3 + $0x58] sm:$0xff] %vm2012_vm2, %v1429_v44  ;;  %2088 = vst.msk [vmem:[%s3783_s3 + $0x258] sm:$0xff] %vm2012_vm2, %v1749_v45 }
 0x102   :  { %2023 = vst.msk [vmem:[%s3783_s3 + $0x50] sm:$0xff] %vm2012_vm2, %v1424_v48  ;;  %2087 = vst.msk [vmem:[%s3783_s3 + $0x250] sm:$0xff] %vm2012_vm2, %v1744_v49 }
 0x106   :  { %v2426_v50 = vpop.f32.mrb[12].mxu0  ;;  %v2522_v51 = vpop.f32.mrb[12].mxu1 }
 0x107   :  { %v1439_v52 = vadd.f32 %v2426_v50, %v3138_v1  ;;  %v1759_v53 = vadd.f32 %v2522_v51, %v3138_v1  ;;  %v1433_v54 = vpop.f32.mrb[13].mxu0  ;;  %v1753_v55 = vpop.f32.mrb[13].mxu1 }
 0x108   :  { %v1434_v56 = vadd.f32 %v3138_v1, %v1433_v54  ;;  %v1754_v57 = vadd.f32 %v3138_v1, %v1753_v55 }
 0x109   :  { %2026 = vst.msk [vmem:[%s3783_s3 + $0x68] sm:$0xff] %vm2012_vm2, %v1439_v52  ;;  %2090 = vst.msk [vmem:[%s3783_s3 + $0x268] sm:$0xff] %vm2012_vm2, %v1759_v53 }
 0x10a   :  { %2025 = vst.msk [vmem:[%s3783_s3 + $0x60] sm:$0xff] %vm2012_vm2, %v1434_v56  ;;  %2089 = vst.msk [vmem:[%s3783_s3 + $0x260] sm:$0xff] %vm2012_vm2, %v1754_v57  ;;  %v2429_v58 = vpop.f32.mrb[14].mxu0  ;;  %v2525_v59 = vpop.f32.mrb[14].mxu1 }
 0x10b   :  { %v1449_v60 = vadd.f32 %v2429_v58, %v3138_v1  ;;  %v1769_v61 = vadd.f32 %v2525_v59, %v3138_v1  ;;  %v1443_v62 = vpop.f32.mrb[15].mxu0  ;;  %v1763_v63 = vpop.f32.mrb[15].mxu1 }
 0x10c   :  { %v1444_v0 = vadd.f32 %v3138_v1, %v1443_v62  ;;  %v1764_v2 = vadd.f32 %v3138_v1, %v1763_v63 }
 0x10d   :  { %2028 = vst.msk [vmem:[%s3783_s3 + $0x78] sm:$0xff] %vm2012_vm2, %v1449_v60  ;;  %2092 = vst.msk [vmem:[%s3783_s3 + $0x278] sm:$0xff] %vm2012_vm2, %v1769_v61 }
 0x10e   :  { %2027 = vst.msk [vmem:[%s3783_s3 + $0x70] sm:$0xff] %vm2012_vm2, %v1444_v0  ;;  %2091 = vst.msk [vmem:[%s3783_s3 + $0x270] sm:$0xff] %vm2012_vm2, %v1764_v2 }
 0x112   :  { %v2432_v3 = vpop.f32.mrb[16].mxu0  ;;  %v2528_v4 = vpop.f32.mrb[16].mxu1 }
 0x113   :  { %v1459_v5 = vadd.f32 %v2432_v3, %v3138_v1  ;;  %v1779_v6 = vadd.f32 %v2528_v4, %v3138_v1  ;;  %v1453_v7 = vpop.f32.mrb[17].mxu0  ;;  %v1773_v8 = vpop.f32.mrb[17].mxu1 }
 0x114   :  { %v1454_v9 = vadd.f32 %v3138_v1, %v1453_v7  ;;  %v1774_v10 = vadd.f32 %v3138_v1, %v1773_v8 }
 0x115   :  { %2030 = vst.msk [vmem:[%s3783_s3 + $0x88] sm:$0xff] %vm2012_vm2, %v1459_v5  ;;  %2094 = vst.msk [vmem:[%s3783_s3 + $0x288] sm:$0xff] %vm2012_vm2, %v1779_v6 }
 0x116   :  { %2029 = vst.msk [vmem:[%s3783_s3 + $0x80] sm:$0xff] %vm2012_vm2, %v1454_v9  ;;  %2093 = vst.msk [vmem:[%s3783_s3 + $0x280] sm:$0xff] %vm2012_vm2, %v1774_v10  ;;  %v2435_v11 = vpop.f32.mrb[18].mxu0  ;;  %v2531_v12 = vpop.f32.mrb[18].mxu1 }
 0x117   :  { %v1469_v13 = vadd.f32 %v2435_v11, %v3138_v1  ;;  %v1789_v14 = vadd.f32 %v2531_v12, %v3138_v1  ;;  %v1463_v15 = vpop.f32.mrb[19].mxu0  ;;  %v1783_v16 = vpop.f32.mrb[19].mxu1 }
 0x118   :  { %v1464_v17 = vadd.f32 %v3138_v1, %v1463_v15  ;;  %v1784_v18 = vadd.f32 %v3138_v1, %v1783_v16 }
 0x119   :  { %2032 = vst.msk [vmem:[%s3783_s3 + $0x98] sm:$0xff] %vm2012_vm2, %v1469_v13  ;;  %2096 = vst.msk [vmem:[%s3783_s3 + $0x298] sm:$0xff] %vm2012_vm2, %v1789_v14 }
 0x11a   :  { %2031 = vst.msk [vmem:[%s3783_s3 + $0x90] sm:$0xff] %vm2012_vm2, %v1464_v17  ;;  %2095 = vst.msk [vmem:[%s3783_s3 + $0x290] sm:$0xff] %vm2012_vm2, %v1784_v18 }
 0x11e   :  { %v2438_v19 = vpop.f32.mrb[20].mxu0  ;;  %v2534_v20 = vpop.f32.mrb[20].mxu1 }
 0x11f   :  { %v1479_v21 = vadd.f32 %v2438_v19, %v3138_v1  ;;  %v1799_v22 = vadd.f32 %v2534_v20, %v3138_v1  ;;  %v1473_v23 = vpop.f32.mrb[21].mxu0  ;;  %v1793_v24 = vpop.f32.mrb[21].mxu1 }
 0x120   :  { %v1474_v25 = vadd.f32 %v3138_v1, %v1473_v23  ;;  %v1794_v26 = vadd.f32 %v3138_v1, %v1793_v24 }
 0x121   :  { %2034 = vst.msk [vmem:[%s3783_s3 + $0xa8] sm:$0xff] %vm2012_vm2, %v1479_v21  ;;  %2098 = vst.msk [vmem:[%s3783_s3 + $0x2a8] sm:$0xff] %vm2012_vm2, %v1799_v22 }
 0x122   :  { %2033 = vst.msk [vmem:[%s3783_s3 + $0xa0] sm:$0xff] %vm2012_vm2, %v1474_v25  ;;  %2097 = vst.msk [vmem:[%s3783_s3 + $0x2a0] sm:$0xff] %vm2012_vm2, %v1794_v26  ;;  %v2441_v27 = vpop.f32.mrb[22].mxu0  ;;  %v2537_v28 = vpop.f32.mrb[22].mxu1 }
 0x123   :  { %v1489_v29 = vadd.f32 %v2441_v27, %v3138_v1  ;;  %v1809_v30 = vadd.f32 %v2537_v28, %v3138_v1  ;;  %v1483_v31 = vpop.f32.mrb[23].mxu0  ;;  %v1803_v32 = vpop.f32.mrb[23].mxu1 }
 0x124   :  { %v1484_v33 = vadd.f32 %v3138_v1, %v1483_v31  ;;  %v1804_v34 = vadd.f32 %v3138_v1, %v1803_v32 }
 0x125   :  { %2036 = vst.msk [vmem:[%s3783_s3 + $0xb8] sm:$0xff] %vm2012_vm2, %v1489_v29  ;;  %2100 = vst.msk [vmem:[%s3783_s3 + $0x2b8] sm:$0xff] %vm2012_vm2, %v1809_v30 }
 0x126   :  { %2035 = vst.msk [vmem:[%s3783_s3 + $0xb0] sm:$0xff] %vm2012_vm2, %v1484_v33  ;;  %2099 = vst.msk [vmem:[%s3783_s3 + $0x2b0] sm:$0xff] %vm2012_vm2, %v1804_v34 }
 0x12a   :  { %v2444_v35 = vpop.f32.mrb[24].mxu0  ;;  %v2540_v36 = vpop.f32.mrb[24].mxu1 }
 0x12b   :  { %v1499_v37 = vadd.f32 %v2444_v35, %v3138_v1  ;;  %v1819_v38 = vadd.f32 %v2540_v36, %v3138_v1  ;;  %v1493_v39 = vpop.f32.mrb[25].mxu0  ;;  %v1813_v40 = vpop.f32.mrb[25].mxu1 }
 0x12c   :  { %v1494_v41 = vadd.f32 %v3138_v1, %v1493_v39  ;;  %v1814_v42 = vadd.f32 %v3138_v1, %v1813_v40 }
 0x12d   :  { %2038 = vst.msk [vmem:[%s3783_s3 + $0xc8] sm:$0xff] %vm2012_vm2, %v1499_v37  ;;  %2102 = vst.msk [vmem:[%s3783_s3 + $0x2c8] sm:$0xff] %vm2012_vm2, %v1819_v38 }
 0x12e   :  { %2037 = vst.msk [vmem:[%s3783_s3 + $0xc0] sm:$0xff] %vm2012_vm2, %v1494_v41  ;;  %2101 = vst.msk [vmem:[%s3783_s3 + $0x2c0] sm:$0xff] %vm2012_vm2, %v1814_v42  ;;  %v2447_v43 = vpop.f32.mrb[26].mxu0  ;;  %v2543_v44 = vpop.f32.mrb[26].mxu1 }
 0x12f   :  { %v1509_v45 = vadd.f32 %v2447_v43, %v3138_v1  ;;  %v1829_v46 = vadd.f32 %v2543_v44, %v3138_v1  ;;  %v1503_v47 = vpop.f32.mrb[27].mxu0  ;;  %v1823_v48 = vpop.f32.mrb[27].mxu1 }
 0x130   :  { %v1504_v49 = vadd.f32 %v3138_v1, %v1503_v47  ;;  %v1824_v50 = vadd.f32 %v3138_v1, %v1823_v48 }
 0x131   :  { %2040 = vst.msk [vmem:[%s3783_s3 + $0xd8] sm:$0xff] %vm2012_vm2, %v1509_v45  ;;  %2104 = vst.msk [vmem:[%s3783_s3 + $0x2d8] sm:$0xff] %vm2012_vm2, %v1829_v46 }
 0x132   :  { %2039 = vst.msk [vmem:[%s3783_s3 + $0xd0] sm:$0xff] %vm2012_vm2, %v1504_v49  ;;  %2103 = vst.msk [vmem:[%s3783_s3 + $0x2d0] sm:$0xff] %vm2012_vm2, %v1824_v50 }
 0x136   :  { %v2450_v51 = vpop.f32.mrb[28].mxu0  ;;  %v2546_v52 = vpop.f32.mrb[28].mxu1 }
 0x137   :  { %v1519_v53 = vadd.f32 %v2450_v51, %v3138_v1  ;;  %v1839_v54 = vadd.f32 %v2546_v52, %v3138_v1  ;;  %v1513_v55 = vpop.f32.mrb[29].mxu0  ;;  %v1833_v56 = vpop.f32.mrb[29].mxu1 }
 0x138   :  { %v1514_v57 = vadd.f32 %v3138_v1, %v1513_v55  ;;  %v1834_v58 = vadd.f32 %v3138_v1, %v1833_v56 }
 0x139   :  { %2042 = vst.msk [vmem:[%s3783_s3 + $0xe8] sm:$0xff] %vm2012_vm2, %v1519_v53  ;;  %2106 = vst.msk [vmem:[%s3783_s3 + $0x2e8] sm:$0xff] %vm2012_vm2, %v1839_v54 }
 0x13a   :  { %2041 = vst.msk [vmem:[%s3783_s3 + $0xe0] sm:$0xff] %vm2012_vm2, %v1514_v57  ;;  %2105 = vst.msk [vmem:[%s3783_s3 + $0x2e0] sm:$0xff] %vm2012_vm2, %v1834_v58  ;;  %v2453_v59 = vpop.f32.mrb[30].mxu0  ;;  %v2549_v60 = vpop.f32.mrb[30].mxu1 }
 0x13b   :  { %v1529_v61 = vadd.f32 %v2453_v59, %v3138_v1  ;;  %v1849_v62 = vadd.f32 %v2549_v60, %v3138_v1  ;;  %v1523_v63 = vpop.f32.mrb[31].mxu0  ;;  %v1843_v0 = vpop.f32.mrb[31].mxu1 }
 0x13c   :  { %v1524_v2 = vadd.f32 %v3138_v1, %v1523_v63  ;;  %v1844_v3 = vadd.f32 %v3138_v1, %v1843_v0 }
 0x13d   :  { %2044 = vst.msk [vmem:[%s3783_s3 + $0xf8] sm:$0xff] %vm2012_vm2, %v1529_v61  ;;  %2108 = vst.msk [vmem:[%s3783_s3 + $0x2f8] sm:$0xff] %vm2012_vm2, %v1849_v62 }
 0x13e   :  { %2043 = vst.msk [vmem:[%s3783_s3 + $0xf0] sm:$0xff] %vm2012_vm2, %v1524_v2  ;;  %2107 = vst.msk [vmem:[%s3783_s3 + $0x2f0] sm:$0xff] %vm2012_vm2, %v1844_v3 }
 0x142   :  { %v2456_v4 = vpop.f32.mrb[32].mxu0  ;;  %v2552_v5 = vpop.f32.mrb[32].mxu1 }
 0x143   :  { %v1539_v6 = vadd.f32 %v2456_v4, %v3138_v1  ;;  %v1859_v7 = vadd.f32 %v2552_v5, %v3138_v1  ;;  %v1533_v8 = vpop.f32.mrb[33].mxu0  ;;  %v1853_v9 = vpop.f32.mrb[33].mxu1 }
 0x144   :  { %v1534_v10 = vadd.f32 %v3138_v1, %v1533_v8  ;;  %v1854_v11 = vadd.f32 %v3138_v1, %v1853_v9 }
 0x145   :  { %2046 = vst.msk [vmem:[%s3783_s3 + $0x108] sm:$0xff] %vm2012_vm2, %v1539_v6  ;;  %2110 = vst.msk [vmem:[%s3783_s3 + $0x308] sm:$0xff] %vm2012_vm2, %v1859_v7 }
 0x146   :  { %2045 = vst.msk [vmem:[%s3783_s3 + $0x100] sm:$0xff] %vm2012_vm2, %v1534_v10  ;;  %2109 = vst.msk [vmem:[%s3783_s3 + $0x300] sm:$0xff] %vm2012_vm2, %v1854_v11  ;;  %v2459_v12 = vpop.f32.mrb[34].mxu0  ;;  %v2555_v13 = vpop.f32.mrb[34].mxu1 }
 0x147   :  { %v1549_v14 = vadd.f32 %v2459_v12, %v3138_v1  ;;  %v1869_v15 = vadd.f32 %v2555_v13, %v3138_v1  ;;  %v1543_v16 = vpop.f32.mrb[35].mxu0  ;;  %v1863_v17 = vpop.f32.mrb[35].mxu1 }
 0x148   :  { %v1544_v18 = vadd.f32 %v3138_v1, %v1543_v16  ;;  %v1864_v19 = vadd.f32 %v3138_v1, %v1863_v17 }
 0x149   :  { %2048 = vst.msk [vmem:[%s3783_s3 + $0x118] sm:$0xff] %vm2012_vm2, %v1549_v14  ;;  %2112 = vst.msk [vmem:[%s3783_s3 + $0x318] sm:$0xff] %vm2012_vm2, %v1869_v15 }
 0x14a   :  { %2047 = vst.msk [vmem:[%s3783_s3 + $0x110] sm:$0xff] %vm2012_vm2, %v1544_v18  ;;  %2111 = vst.msk [vmem:[%s3783_s3 + $0x310] sm:$0xff] %vm2012_vm2, %v1864_v19 }
 0x14e   :  { %v2462_v20 = vpop.f32.mrb[36].mxu0  ;;  %v2558_v21 = vpop.f32.mrb[36].mxu1 }
 0x14f   :  { %v1559_v22 = vadd.f32 %v2462_v20, %v3138_v1  ;;  %v1879_v23 = vadd.f32 %v2558_v21, %v3138_v1  ;;  %v1553_v24 = vpop.f32.mrb[37].mxu0  ;;  %v1873_v25 = vpop.f32.mrb[37].mxu1 }
 0x150   :  { %v1554_v26 = vadd.f32 %v3138_v1, %v1553_v24  ;;  %v1874_v27 = vadd.f32 %v3138_v1, %v1873_v25 }
 0x151   :  { %2050 = vst.msk [vmem:[%s3783_s3 + $0x128] sm:$0xff] %vm2012_vm2, %v1559_v22  ;;  %2114 = vst.msk [vmem:[%s3783_s3 + $0x328] sm:$0xff] %vm2012_vm2, %v1879_v23 }
 0x152   :  { %2049 = vst.msk [vmem:[%s3783_s3 + $0x120] sm:$0xff] %vm2012_vm2, %v1554_v26  ;;  %2113 = vst.msk [vmem:[%s3783_s3 + $0x320] sm:$0xff] %vm2012_vm2, %v1874_v27  ;;  %v2465_v28 = vpop.f32.mrb[38].mxu0  ;;  %v2561_v29 = vpop.f32.mrb[38].mxu1 }
 0x153   :  { %v1569_v30 = vadd.f32 %v2465_v28, %v3138_v1  ;;  %v1889_v31 = vadd.f32 %v2561_v29, %v3138_v1  ;;  %v1563_v32 = vpop.f32.mrb[39].mxu0  ;;  %v1883_v33 = vpop.f32.mrb[39].mxu1 }
 0x154   :  { %v1564_v34 = vadd.f32 %v3138_v1, %v1563_v32  ;;  %v1884_v35 = vadd.f32 %v3138_v1, %v1883_v33 }
 0x155   :  { %2052 = vst.msk [vmem:[%s3783_s3 + $0x138] sm:$0xff] %vm2012_vm2, %v1569_v30  ;;  %2116 = vst.msk [vmem:[%s3783_s3 + $0x338] sm:$0xff] %vm2012_vm2, %v1889_v31 }
 0x156   :  { %2051 = vst.msk [vmem:[%s3783_s3 + $0x130] sm:$0xff] %vm2012_vm2, %v1564_v34  ;;  %2115 = vst.msk [vmem:[%s3783_s3 + $0x330] sm:$0xff] %vm2012_vm2, %v1884_v35 }
 0x15a   :  { %v2468_v36 = vpop.f32.mrb[40].mxu0  ;;  %v2564_v37 = vpop.f32.mrb[40].mxu1 }
 0x15b   :  { %v1579_v38 = vadd.f32 %v2468_v36, %v3138_v1  ;;  %v1899_v39 = vadd.f32 %v2564_v37, %v3138_v1  ;;  %v1573_v40 = vpop.f32.mrb[41].mxu0  ;;  %v1893_v41 = vpop.f32.mrb[41].mxu1 }
 0x15c   :  { %v1574_v42 = vadd.f32 %v3138_v1, %v1573_v40  ;;  %v1894_v43 = vadd.f32 %v3138_v1, %v1893_v41 }
 0x15d   :  { %2054 = vst.msk [vmem:[%s3783_s3 + $0x148] sm:$0xff] %vm2012_vm2, %v1579_v38  ;;  %2118 = vst.msk [vmem:[%s3783_s3 + $0x348] sm:$0xff] %vm2012_vm2, %v1899_v39 }
 0x15e   :  { %2053 = vst.msk [vmem:[%s3783_s3 + $0x140] sm:$0xff] %vm2012_vm2, %v1574_v42  ;;  %2117 = vst.msk [vmem:[%s3783_s3 + $0x340] sm:$0xff] %vm2012_vm2, %v1894_v43  ;;  %v2471_v44 = vpop.f32.mrb[42].mxu0  ;;  %v2567_v45 = vpop.f32.mrb[42].mxu1 }
 0x15f   :  { %v1589_v46 = vadd.f32 %v2471_v44, %v3138_v1  ;;  %v1909_v47 = vadd.f32 %v2567_v45, %v3138_v1  ;;  %v1583_v48 = vpop.f32.mrb[43].mxu0  ;;  %v1903_v49 = vpop.f32.mrb[43].mxu1 }
 0x160   :  { %v1584_v50 = vadd.f32 %v3138_v1, %v1583_v48  ;;  %v1904_v51 = vadd.f32 %v3138_v1, %v1903_v49 }
 0x161   :  { %2056 = vst.msk [vmem:[%s3783_s3 + $0x158] sm:$0xff] %vm2012_vm2, %v1589_v46  ;;  %2120 = vst.msk [vmem:[%s3783_s3 + $0x358] sm:$0xff] %vm2012_vm2, %v1909_v47 }
 0x162   :  { %2055 = vst.msk [vmem:[%s3783_s3 + $0x150] sm:$0xff] %vm2012_vm2, %v1584_v50  ;;  %2119 = vst.msk [vmem:[%s3783_s3 + $0x350] sm:$0xff] %vm2012_vm2, %v1904_v51 }
 0x166   :  { %v2474_v52 = vpop.f32.mrb[44].mxu0  ;;  %v2570_v53 = vpop.f32.mrb[44].mxu1 }
 0x167   :  { %v1599_v54 = vadd.f32 %v2474_v52, %v3138_v1  ;;  %v1919_v55 = vadd.f32 %v2570_v53, %v3138_v1  ;;  %v1593_v56 = vpop.f32.mrb[45].mxu0  ;;  %v1913_v57 = vpop.f32.mrb[45].mxu1 }
 0x168   :  { %v1594_v58 = vadd.f32 %v3138_v1, %v1593_v56  ;;  %v1914_v59 = vadd.f32 %v3138_v1, %v1913_v57 }
 0x169   :  { %2058 = vst.msk [vmem:[%s3783_s3 + $0x168] sm:$0xff] %vm2012_vm2, %v1599_v54  ;;  %2122 = vst.msk [vmem:[%s3783_s3 + $0x368] sm:$0xff] %vm2012_vm2, %v1919_v55 }
 0x16a   :  { %2057 = vst.msk [vmem:[%s3783_s3 + $0x160] sm:$0xff] %vm2012_vm2, %v1594_v58  ;;  %2121 = vst.msk [vmem:[%s3783_s3 + $0x360] sm:$0xff] %vm2012_vm2, %v1914_v59  ;;  %v2477_v60 = vpop.f32.mrb[46].mxu0  ;;  %v2573_v61 = vpop.f32.mrb[46].mxu1 }
 0x16b   :  { %v1609_v62 = vadd.f32 %v2477_v60, %v3138_v1  ;;  %v1929_v63 = vadd.f32 %v2573_v61, %v3138_v1  ;;  %v1603_v0 = vpop.f32.mrb[47].mxu0  ;;  %v1923_v2 = vpop.f32.mrb[47].mxu1 }
 0x16c   :  { %v1604_v3 = vadd.f32 %v3138_v1, %v1603_v0  ;;  %v1924_v4 = vadd.f32 %v3138_v1, %v1923_v2 }
 0x16d   :  { %2060 = vst.msk [vmem:[%s3783_s3 + $0x178] sm:$0xff] %vm2012_vm2, %v1609_v62  ;;  %2124 = vst.msk [vmem:[%s3783_s3 + $0x378] sm:$0xff] %vm2012_vm2, %v1929_v63 }
 0x16e   :  { %2059 = vst.msk [vmem:[%s3783_s3 + $0x170] sm:$0xff] %vm2012_vm2, %v1604_v3  ;;  %2123 = vst.msk [vmem:[%s3783_s3 + $0x370] sm:$0xff] %vm2012_vm2, %v1924_v4 }
 0x172   :  { %v2480_v5 = vpop.f32.mrb[48].mxu0  ;;  %v2576_v6 = vpop.f32.mrb[48].mxu1 }
 0x173   :  { %v1619_v7 = vadd.f32 %v2480_v5, %v3138_v1  ;;  %v1939_v8 = vadd.f32 %v2576_v6, %v3138_v1  ;;  %v1613_v9 = vpop.f32.mrb[49].mxu0  ;;  %v1933_v10 = vpop.f32.mrb[49].mxu1 }
 0x174   :  { %v1614_v11 = vadd.f32 %v3138_v1, %v1613_v9  ;;  %v1934_v12 = vadd.f32 %v3138_v1, %v1933_v10 }
 0x175   :  { %2062 = vst.msk [vmem:[%s3783_s3 + $0x188] sm:$0xff] %vm2012_vm2, %v1619_v7  ;;  %2126 = vst.msk [vmem:[%s3783_s3 + $0x388] sm:$0xff] %vm2012_vm2, %v1939_v8 }
 0x176   :  { %2061 = vst.msk [vmem:[%s3783_s3 + $0x180] sm:$0xff] %vm2012_vm2, %v1614_v11  ;;  %2125 = vst.msk [vmem:[%s3783_s3 + $0x380] sm:$0xff] %vm2012_vm2, %v1934_v12  ;;  %v2483_v13 = vpop.f32.mrb[50].mxu0  ;;  %v2579_v14 = vpop.f32.mrb[50].mxu1 }
 0x177   :  { %v1629_v15 = vadd.f32 %v2483_v13, %v3138_v1  ;;  %v1949_v16 = vadd.f32 %v2579_v14, %v3138_v1  ;;  %v1623_v17 = vpop.f32.mrb[51].mxu0  ;;  %v1943_v18 = vpop.f32.mrb[51].mxu1 }
 0x178   :  { %v1624_v19 = vadd.f32 %v3138_v1, %v1623_v17  ;;  %v1944_v20 = vadd.f32 %v3138_v1, %v1943_v18 }
 0x179   :  { %2064 = vst.msk [vmem:[%s3783_s3 + $0x198] sm:$0xff] %vm2012_vm2, %v1629_v15  ;;  %2128 = vst.msk [vmem:[%s3783_s3 + $0x398] sm:$0xff] %vm2012_vm2, %v1949_v16 }
 0x17a   :  { %2063 = vst.msk [vmem:[%s3783_s3 + $0x190] sm:$0xff] %vm2012_vm2, %v1624_v19  ;;  %2127 = vst.msk [vmem:[%s3783_s3 + $0x390] sm:$0xff] %vm2012_vm2, %v1944_v20 }
 0x17e   :  { %v2486_v21 = vpop.f32.mrb[52].mxu0  ;;  %v2582_v22 = vpop.f32.mrb[52].mxu1 }
 0x17f   :  { %v1639_v23 = vadd.f32 %v2486_v21, %v3138_v1  ;;  %v1959_v24 = vadd.f32 %v2582_v22, %v3138_v1  ;;  %v1633_v25 = vpop.f32.mrb[53].mxu0  ;;  %v1953_v26 = vpop.f32.mrb[53].mxu1 }
 0x180   :  { %v1634_v27 = vadd.f32 %v3138_v1, %v1633_v25  ;;  %v1954_v28 = vadd.f32 %v3138_v1, %v1953_v26 }
 0x181   :  { %2066 = vst.msk [vmem:[%s3783_s3 + $0x1a8] sm:$0xff] %vm2012_vm2, %v1639_v23  ;;  %2130 = vst.msk [vmem:[%s3783_s3 + $0x3a8] sm:$0xff] %vm2012_vm2, %v1959_v24 }
 0x182   :  { %2065 = vst.msk [vmem:[%s3783_s3 + $0x1a0] sm:$0xff] %vm2012_vm2, %v1634_v27  ;;  %2129 = vst.msk [vmem:[%s3783_s3 + $0x3a0] sm:$0xff] %vm2012_vm2, %v1954_v28  ;;  %v2489_v29 = vpop.f32.mrb[54].mxu0  ;;  %v2585_v30 = vpop.f32.mrb[54].mxu1 }
 0x183   :  { %v1649_v31 = vadd.f32 %v2489_v29, %v3138_v1  ;;  %v1969_v32 = vadd.f32 %v2585_v30, %v3138_v1  ;;  %v1643_v33 = vpop.f32.mrb[55].mxu0  ;;  %v1963_v34 = vpop.f32.mrb[55].mxu1 }
 0x184   :  { %v1644_v35 = vadd.f32 %v3138_v1, %v1643_v33  ;;  %v1964_v36 = vadd.f32 %v3138_v1, %v1963_v34 }
 0x185   :  { %2068 = vst.msk [vmem:[%s3783_s3 + $0x1b8] sm:$0xff] %vm2012_vm2, %v1649_v31  ;;  %2132 = vst.msk [vmem:[%s3783_s3 + $0x3b8] sm:$0xff] %vm2012_vm2, %v1969_v32 }
 0x186   :  { %2067 = vst.msk [vmem:[%s3783_s3 + $0x1b0] sm:$0xff] %vm2012_vm2, %v1644_v35  ;;  %2131 = vst.msk [vmem:[%s3783_s3 + $0x3b0] sm:$0xff] %vm2012_vm2, %v1964_v36 }
 0x18a   :  { %v2492_v37 = vpop.f32.mrb[56].mxu0  ;;  %v2588_v38 = vpop.f32.mrb[56].mxu1 }
 0x18b   :  { %v1659_v39 = vadd.f32 %v2492_v37, %v3138_v1  ;;  %v1979_v40 = vadd.f32 %v2588_v38, %v3138_v1  ;;  %v1653_v41 = vpop.f32.mrb[57].mxu0  ;;  %v1973_v42 = vpop.f32.mrb[57].mxu1 }
 0x18c   :  { %v1654_v43 = vadd.f32 %v3138_v1, %v1653_v41  ;;  %v1974_v44 = vadd.f32 %v3138_v1, %v1973_v42 }
 0x18d   :  { %2070 = vst.msk [vmem:[%s3783_s3 + $0x1c8] sm:$0xff] %vm2012_vm2, %v1659_v39  ;;  %2134 = vst.msk [vmem:[%s3783_s3 + $0x3c8] sm:$0xff] %vm2012_vm2, %v1979_v40 }
 0x18e   :  { %2069 = vst.msk [vmem:[%s3783_s3 + $0x1c0] sm:$0xff] %vm2012_vm2, %v1654_v43  ;;  %2133 = vst.msk [vmem:[%s3783_s3 + $0x3c0] sm:$0xff] %vm2012_vm2, %v1974_v44  ;;  %v2495_v45 = vpop.f32.mrb[58].mxu0  ;;  %v2591_v46 = vpop.f32.mrb[58].mxu1 }
 0x18f   :  { %v1669_v47 = vadd.f32 %v2495_v45, %v3138_v1  ;;  %v1989_v48 = vadd.f32 %v2591_v46, %v3138_v1  ;;  %v1663_v49 = vpop.f32.mrb[59].mxu0  ;;  %v1983_v50 = vpop.f32.mrb[59].mxu1 }
 0x190   :  { %v1664_v51 = vadd.f32 %v3138_v1, %v1663_v49  ;;  %v1984_v52 = vadd.f32 %v3138_v1, %v1983_v50 }
 0x191   :  { %2072 = vst.msk [vmem:[%s3783_s3 + $0x1d8] sm:$0xff] %vm2012_vm2, %v1669_v47  ;;  %2136 = vst.msk [vmem:[%s3783_s3 + $0x3d8] sm:$0xff] %vm2012_vm2, %v1989_v48 }
 0x192   :  { %2071 = vst.msk [vmem:[%s3783_s3 + $0x1d0] sm:$0xff] %vm2012_vm2, %v1664_v51  ;;  %2135 = vst.msk [vmem:[%s3783_s3 + $0x3d0] sm:$0xff] %vm2012_vm2, %v1984_v52 }
 0x196   :  { %v2498_v53 = vpop.f32.mrb[60].mxu0  ;;  %v2594_v54 = vpop.f32.mrb[60].mxu1 }
 0x197   :  { %v1679_v55 = vadd.f32 %v2498_v53, %v3138_v1  ;;  %v1999_v56 = vadd.f32 %v2594_v54, %v3138_v1  ;;  %v1673_v57 = vpop.f32.mrb[61].mxu0  ;;  %v1993_v58 = vpop.f32.mrb[61].mxu1 }
 0x198   :  { %v1674_v59 = vadd.f32 %v3138_v1, %v1673_v57  ;;  %v1994_v60 = vadd.f32 %v3138_v1, %v1993_v58 }
 0x199   :  { %2074 = vst.msk [vmem:[%s3783_s3 + $0x1e8] sm:$0xff] %vm2012_vm2, %v1679_v55  ;;  %2138 = vst.msk [vmem:[%s3783_s3 + $0x3e8] sm:$0xff] %vm2012_vm2, %v1999_v56 }
 0x19a   :  { %2073 = vst.msk [vmem:[%s3783_s3 + $0x1e0] sm:$0xff] %vm2012_vm2, %v1674_v59  ;;  %2137 = vst.msk [vmem:[%s3783_s3 + $0x3e0] sm:$0xff] %vm2012_vm2, %v1994_v60  ;;  %v2501_v61 = vpop.f32.mrb[62].mxu0  ;;  %v2597_v62 = vpop.f32.mrb[62].mxu1 }
 0x19b   :  { %v1689_v63 = vadd.f32 %v2501_v61, %v3138_v1  ;;  %v2009_v0 = vadd.f32 %v2597_v62, %v3138_v1  ;;  %v1683_v2 = vpop.f32.mrb[63].mxu0  ;;  %v2003_v3 = vpop.f32.mrb[63].mxu1 }
 0x19c   :  { %v1684_v4 = vadd.f32 %v3138_v1, %v1683_v2  ;;  %v2004_v5 = vadd.f32 %v3138_v1, %v2003_v3 }
 0x19d   :  { %2076 = vst.msk [vmem:[%s3783_s3 + $0x1f8] sm:$0xff] %vm2012_vm2, %v1689_v63  ;;  %2140 = vst.msk [vmem:[%s3783_s3 + $0x3f8] sm:$0xff] %vm2012_vm2, %v2009_v0 }
 0x19e   :  { %2075 = vst.msk [vmem:[%s3783_s3 + $0x1f0] sm:$0xff] %vm2012_vm2, %v1684_v4  ;;  %2139 = vst.msk [vmem:[%s3783_s3 + $0x3f0] sm:$0xff] %vm2012_vm2, %v2004_v5 }

</bundles_post_ra>
